<compile_context>
chip_gen: v7x
topology: tpu7x:2x2x1
jax: 0.10.0
libtpu: 0.0.40
codegen_flags: <defaults>
</compile_context>

<pallas_src>
import functools

import jax
import jax.numpy as jnp
from jax.experimental import pallas as pl
from jax.experimental.pallas import tpu as pltpu

LANE = 128       # TPU lane width: all feature axes padded to this
TE = 128         # edge-row tile for the decoder / fused kernel
MIB = 1024 * 1024


def _round_up(x, m):
    return (x + m - 1) // m * m


def _pad2d(a, rows, cols, dtype=None):
    r, c = a.shape
    out = jnp.pad(a, ((0, rows - r), (0, cols - c)))
    return out.astype(dtype) if dtype is not None else out


def _pick_tile(dim, max_tile):
    for t in (512, 256, 128):
        if t <= max_tile and dim % t == 0:
            return t
    return 128


def _hw_config():
    """Per-generation tile sizes and scoped-VMEM budget."""
    kind = ""
    try:
        kind = jax.devices()[0].device_kind.lower()
    except Exception:
        pass
    if ("v5e" in kind) or ("v5 lite" in kind) or ("v5lite" in kind):
        # 4x128x128 MXU, 128 MiB VMEM, HBM-bound aggregation.
        return dict(tm=128, tn=128, tk=512, vmem_limit=100 * MIB,
                    fused_budget=48 * MIB)
    if "v7" in kind:
        # 2x256x256 MXU, but only 64 MiB VMEM -> leave compiler headroom.
        return dict(tm=256, tn=256, tk=512, vmem_limit=48 * MIB,
                    fused_budget=24 * MIB)
    if "v6" in kind:
        # 2x256x256 MXU, 128 MiB VMEM.
        return dict(tm=256, tn=256, tk=512, vmem_limit=100 * MIB,
                    fused_budget=48 * MIB)
    # Unknown chip (v4/v5p/CPU interpret): conservative defaults.
    return dict(tm=128, tn=128, tk=256, vmem_limit=64 * MIB,
                fused_budget=24 * MIB)


# =============================================================================
# Fully fused forward kernel (small/medium graphs: everything VMEM-resident)
# =============================================================================

def _fused_forward_kernel(num_layers,
                          x_ref, a_ref, nw_ref, nb_ref, gw_ref, gb_ref,
                          ea_ref, ew_ref, eb_ref, src_ref, dst_ref,
                          d1w_ref, d1b_ref, d2wt_ref, d2b_ref,
                          o_ref, h_scratch):
    """Grid = (E_pad // TE,).  Node path runs once (step 0) into VMEM scratch;
    every step then encodes / gathers / decodes one tile of edges."""

    # ---- node path: encoder + stacked GCNConv, f32 end-to-end, VMEM-resident
    @pl.when(pl.program_id(0) == 0)
    def _():
        h = jnp.dot(x_ref[...], nw_ref[...],
                    preferred_element_type=jnp.float32) + nb_ref[...]
        for layer in range(num_layers):            # static unroll
            xw = jnp.dot(h, gw_ref[layer], preferred_element_type=jnp.float32)
            h = jnp.dot(a_ref[...], xw,
                        preferred_element_type=jnp.float32) + gb_ref[layer]
            # TODO(synk): exact inter-layer activation of GCNConvLayer is
            # unspecified; assuming ReLU between layers (none after the last).
            if layer < num_layers - 1:
                h = jnp.maximum(h, 0.0)
        h_scratch[...] = h

    # ---- per edge-tile decoder ------------------------------------------------
    te = ea_ref.shape[0]
    n_pad = a_ref.shape[0]

    # edge encoder (plain Linear)
    e_enc = jnp.dot(ea_ref[...], ew_ref[...],
                    preferred_element_type=jnp.float32) + eb_ref[...]

    # fused gather of h[src], h[dst] as one-hot MXU matmuls (no XLA gather,
    # no (E, 3H) z tensor in HBM)
    node_ids = jax.lax.broadcasted_iota(jnp.int32, (te, n_pad), 1)
    src_oh = (node_ids == src_ref[...]).astype(jnp.float32)
    dst_oh = (node_ids == dst_ref[...]).astype(jnp.float32)
    h = h_scratch[...]
    h_src = jnp.dot(src_oh, h, preferred_element_type=jnp.float32)
    h_dst = jnp.dot(dst_oh, h, preferred_element_type=jnp.float32)

    # decoder layer 1, concat-free: [h_src | h_dst | e_enc] @ W1 as 3 matmuls
    z1 = (jnp.dot(h_src, d1w_ref[0], preferred_element_type=jnp.float32)
          + jnp.dot(h_dst, d1w_ref[1], preferred_element_type=jnp.float32)
          + jnp.dot(e_enc, d1w_ref[2], preferred_element_type=jnp.float32)
          + d1b_ref[...])
    h1 = jnp.maximum(z1, 0.0)

    # decoder layer 2: single logit, produced lane-dense as a (1, te) row by
    # contracting on the hidden axis of both operands (w2^T @ h1^T on the MXU).
    logits = jax.lax.dot_general(d2wt_ref[...], h1,
                                 (((1,), (1,)), ((), ())),
                                 preferred_element_type=jnp.float32)  # (8, te)
    o_ref[...] = logits[0:1, :] + d2b_ref[...]


def _fused_vmem_bytes(n_pad, fn_pad, fe_pad, h_pad, num_layers):
    f32 = 4
    resident = (n_pad * fn_pad + n_pad * n_pad
                + fn_pad * h_pad + h_pad
                + num_layers * h_pad * h_pad + num_layers * h_pad
                + fe_pad * h_pad + h_pad
                + 3 * h_pad * h_pad + h_pad + 8 * h_pad + 1
                + n_pad * h_pad) * f32
    per_tile = (TE * fe_pad + 2 * TE + TE) * f32 * 2      # double-buffered streams
    return resident + per_tile


def _forward_fused(params, x, edge_index, edge_attr, edge_weight,
                   n_pad, e_pad, normalize, add_self_loops, vmem_limit):
    N = x.shape[0]
    E = edge_index.shape[1]
    fn_pad = params["node_w"].shape[0]
    fe_pad = params["edge_w"].shape[0]
    h_pad = params["node_w"].shape[1]
    num_layers = int(params["gnn_w"].shape[0])

    x_p = _pad2d(x.astype(jnp.float32), n_pad, fn_pad)
    ea_p = _pad2d(edge_attr.astype(jnp.float32), e_pad, fe_pad)
    a_hat = dense_gcn_adjacency(edge_index, edge_weight, N, n_pad, jnp.float32,
                                normalize=normalize,
                                add_self_loops=add_self_loops)
    src = jnp.pad(edge_index[0].astype(jnp.int32), (0, e_pad - E)).reshape(e_pad, 1)
    dst = jnp.pad(edge_index[1].astype(jnp.int32), (0, e_pad - E)).reshape(e_pad, 1)

    def full(shape):
        return pl.BlockSpec(shape, lambda e, _s=shape: (0,) * len(_s))

    flops = 2 * (n_pad * fn_pad * h_pad
                 + num_layers * (n_pad * h_pad * h_pad + n_pad * n_pad * h_pad)
                 + e_pad * (fe_pad * h_pad + 2 * n_pad * h_pad
                            + 3 * h_pad * h_pad + h_pad))
    bytes_accessed = 4 * (x_p.size + a_hat.size + ea_p.size
                          + params["node_w"].size + params["edge_w"].size
                          + params["gnn_w"].size + params["dec1_w"].size
                          + 2 * e_pad + e_pad)
    cost = pl.CostEstimate(flops=int(flops), transcendentals=0,
                           bytes_accessed=int(bytes_accessed))

    # TODO(synk): with a single edge tile the one-axis grid cannot shard across
    # v7x's two TensorCores; a core_map split of the edge tiles would fix that.
    out = pl.pallas_call(
        functools.partial(_fused_forward_kernel, num_layers),
        out_shape=jax.ShapeDtypeStruct((1, e_pad), jnp.float32),
        grid_spec=pltpu.PrefetchScalarGridSpec(
            num_scalar_prefetch=0,
            grid=(e_pad // TE,),
            in_specs=[
                full((n_pad, fn_pad)),                      # x
                full((n_pad, n_pad)),                       # A_hat (VMEM-resident)
                full((fn_pad, h_pad)), full((1, h_pad)),    # node encoder
                full((num_layers, h_pad, h_pad)),           # GCN weights
                full((num_layers, 1, h_pad)),               # GCN biases
                pl.BlockSpec((TE, fe_pad), lambda e: (e, 0)),   # edge_attr tile
                full((fe_pad, h_pad)), full((1, h_pad)),    # edge encoder
                pl.BlockSpec((TE, 1), lambda e: (e, 0)),    # src ids tile
                pl.BlockSpec((TE, 1), lambda e: (e, 0)),    # dst ids tile
                full((3, h_pad, h_pad)), full((1, h_pad)),  # decoder layer 1
                full((8, h_pad)), full((1, 1)),             # decoder layer 2
            ],
            out_specs=pl.BlockSpec((1, TE), lambda e: (0, e)),
            scratch_shapes=[pltpu.VMEM((n_pad, h_pad), jnp.float32)]),
        compiler_params=pltpu.CompilerParams(
            dimension_semantics=("arbitrary",),     # node path computed once at step 0
            vmem_limit_bytes=int(vmem_limit)),
        cost_estimate=cost,
    )(x_p, a_hat, params["node_w"], params["node_b"],
      params["gnn_w"], params["gnn_b"],
      ea_p, params["edge_w"], params["edge_b"],
      src, dst,
      params["dec1_w"], params["dec1_b"],
      params["dec2_wt"], params["dec2_bs"])
    return out[0, :E].reshape(E, 1)


# =============================================================================
# General tiled fallback (large graphs)
# =============================================================================

def _matmul_kernel(apply_relu, x_ref, w_ref, b_ref, o_ref, acc_ref):
    k = pl.program_id(2)

    @pl.when(k == 0)
    def _():
        acc_ref[...] = jnp.zeros_like(acc_ref)

    acc_ref[...] += jnp.dot(x_ref[...], w_ref[...],
                            preferred_element_type=jnp.float32)

    @pl.when(k == pl.num_programs(2) - 1)
    def _():
        out = acc_ref[...] + b_ref[...]
        if apply_relu:
            out = jnp.maximum(out, 0.0)
        o_ref[...] = out.astype(o_ref.dtype)


def pallas_matmul(x, w, b=None, *, relu=False, out_dtype=jnp.bfloat16,
                  tm, tn, tk, vmem_limit):
    """Tiled  x @ w + b  (optional ReLU).  All dims must be tile-multiples."""
    M, K = x.shape
    K2, N = w.shape
    assert K == K2 and M % tm == 0 and N % tn == 0 and K % tk == 0
    if b is None:
        b = jnp.zeros((1, N), jnp.float32)
    cost = pl.CostEstimate(
        flops=2 * M * N * K, transcendentals=0,
        bytes_accessed=(x.size * x.dtype.itemsize + w.size * w.dtype.itemsize
                        + b.size * 4 + M * N * jnp.dtype(out_dtype).itemsize))
    return pl.pallas_call(
        functools.partial(_matmul_kernel, relu),
        out_shape=jax.ShapeDtypeStruct((M, N), out_dtype),
        grid_spec=pltpu.PrefetchScalarGridSpec(
            num_scalar_prefetch=0,
            grid=(M // tm, N // tn, K // tk),
            in_specs=[pl.BlockSpec((tm, tk), lambda i, j, k: (i, k)),
                      pl.BlockSpec((tk, tn), lambda i, j, k: (k, j)),
                      pl.BlockSpec((1, tn), lambda i, j, k: (0, j))],
            out_specs=pl.BlockSpec((tm, tn), lambda i, j, k: (i, j)),
            scratch_shapes=[pltpu.VMEM((tm, tn), jnp.float32)]),
        compiler_params=pltpu.CompilerParams(
            dimension_semantics=("parallel", "parallel", "arbitrary"),
            vmem_limit_bytes=int(vmem_limit)),
        cost_estimate=cost,
    )(x, w, b)


def _gcn_layer_kernel(apply_relu, a_ref, x_ref, w_ref, b_ref, o_ref, acc_ref):
    """Fused GCN layer tile:  acc += A[i,k] @ (X[k,:] @ W);  epilogue +b / ReLU.
    XW is staged on-chip per K-tile (never written to HBM)."""
    k = pl.program_id(1)

    @pl.when(k == 0)
    def _():
        acc_ref[...] = jnp.zeros_like(acc_ref)

    xw = jnp.dot(x_ref[...], w_ref[...], preferred_element_type=jnp.float32)
    acc_ref[...] += jnp.dot(a_ref[...], xw.astype(x_ref.dtype),
                            preferred_element_type=jnp.float32)

    @pl.when(k == pl.num_programs(1) - 1)
    def _():
        out = acc_ref[...] + b_ref[...]
        if apply_relu:
            out = jnp.maximum(out, 0.0)
        o_ref[...] = out.astype(o_ref.dtype)


def pallas_gcn_layer(a_hat, x, w, b, *, relu, tm, tk, vmem_limit,
                     out_dtype=jnp.bfloat16):
    N, N2 = a_hat.shape
    N3, H = x.shape
    assert N == N2 == N3 and w.shape == (H, H) and b.shape == (1, H)
    assert N % tm == 0 and N % tk == 0
    cost = pl.CostEstimate(
        flops=2 * N * N * H + 2 * (N // tm) * N * H * H,
        transcendentals=0,
        bytes_accessed=(a_hat.size * 2 + (N // tm) * x.size * 2
                        + w.size * 2 + b.size * 4 + N * H * 2))
    # TODO(synk): on v5e add pipeline_mode=pl.Buffered(3) on the A_hat spec to
    # hide the HBM-bound adjacency stream; TODO(synk): keep A_hat VMEM-resident
    # across layers when N_pad^2 fits (the fused path already does this).
    return pl.pallas_call(
        functools.partial(_gcn_layer_kernel, relu),
        out_shape=jax.ShapeDtypeStruct((N, H), out_dtype),
        grid_spec=pltpu.PrefetchScalarGridSpec(
            num_scalar_prefetch=0,
            grid=(N // tm, N // tk),
            in_specs=[pl.BlockSpec((tm, tk), lambda i, k: (i, k)),   # A_hat
                      pl.BlockSpec((tk, H), lambda i, k: (k, 0)),    # X rows
                      pl.BlockSpec((H, H), lambda i, k: (0, 0)),     # W (resident)
                      pl.BlockSpec((1, H), lambda i, k: (0, 0))],    # bias
            out_specs=pl.BlockSpec((tm, H), lambda i, k: (i, 0)),
            scratch_shapes=[pltpu.VMEM((tm, H), jnp.float32)]),
        compiler_params=pltpu.CompilerParams(
            dimension_semantics=("parallel", "arbitrary"),
            vmem_limit_bytes=int(vmem_limit)),
        cost_estimate=cost,
    )(a_hat, x, w, b)


def _edge_mlp_kernel(z_ref, w1_ref, b1_ref, w2t_ref, b2_ref, o_ref):
    h = jnp.dot(z_ref[...], w1_ref[...], preferred_element_type=jnp.float32)
    h = jnp.maximum(h + b1_ref[...], 0.0)
    logits = jax.lax.dot_general(w2t_ref[...], h.astype(w2t_ref.dtype),
                                 (((1,), (1,)), ((), ())),
                                 preferred_element_type=jnp.float32)  # (8, TE)
    o_ref[...] = logits[0:1, :] + b2_ref[...]


def pallas_edge_mlp(z, w1, b1, w2t, b2, *, vmem_limit):
    E_pad, ZD = z.shape
    H = w1.shape[1]
    assert E_pad % TE == 0 and w1.shape[0] == ZD and w2t.shape == (8, H)
    return pl.pallas_call(
        _edge_mlp_kernel,
        out_shape=jax.ShapeDtypeStruct((1, E_pad), jnp.float32),
        grid_spec=pltpu.PrefetchScalarGridSpec(
            num_scalar_prefetch=0,
            grid=(E_pad // TE,),
            in_specs=[pl.BlockSpec((TE, ZD), lambda e: (e, 0)),
                      pl.BlockSpec((ZD, H), lambda e: (0, 0)),
                      pl.BlockSpec((1, H), lambda e: (0, 0)),
                      pl.BlockSpec((8, H), lambda e: (0, 0)),
                      pl.BlockSpec((1, 1), lambda e: (0, 0))],
            out_specs=pl.BlockSpec((1, TE), lambda e: (0, e))),
        compiler_params=pltpu.CompilerParams(
            dimension_semantics=("parallel",),
            vmem_limit_bytes=int(vmem_limit)),
    )(z, w1, b1, w2t, b2)


def _forward_tiled(params, x, edge_index, edge_attr, edge_weight, cfg,
                   normalize, add_self_loops):
    N = x.shape[0]
    E = edge_index.shape[1]
    fn_pad = params["node_w"].shape[0]
    fe_pad = params["edge_w"].shape[0]
    h_pad = params["node_w"].shape[1]
    num_layers = int(params["gnn_w"].shape[0])
    vmem = cfg["vmem_limit"]

    n_pad = _round_up(max(N, 128), max(cfg["tm"], cfg["tk"]))
    e_pad = _round_up(max(E, 128), TE)
    tm_n = _pick_tile(n_pad, cfg["tm"])
    tk_n = _pick_tile(n_pad, cfg["tk"])
    t_h = _pick_tile(h_pad, cfg["tn"])
    tk_fn = _pick_tile(fn_pad, cfg["tk"])
    tk_fe = _pick_tile(fe_pad, cfg["tk"])

    x_p = _pad2d(x.astype(jnp.float32), n_pad, fn_pad).astype(jnp.bfloat16)
    ea_p = _pad2d(edge_attr.astype(jnp.float32), e_pad, fe_pad).astype(jnp.bfloat16)

    # --- encoder ---
    h = pallas_matmul(x_p, params["node_w"].astype(jnp.bfloat16),
                      params["node_b"], tm=tm_n, tn=t_h, tk=tk_fn,
                      vmem_limit=vmem)
    e_enc = pallas_matmul(ea_p, params["edge_w"].astype(jnp.bfloat16),
                          params["edge_b"], tm=_pick_tile(e_pad, cfg["tm"]),
                          tn=t_h, tk=tk_fe, vmem_limit=vmem)

    # --- GCN layers: fused X@W -> A_hat@XW + b (+ReLU) per pallas_call ---
    a_hat = dense_gcn_adjacency(edge_index, edge_weight, N, n_pad, jnp.bfloat16,
                                normalize=normalize,
                                add_self_loops=add_self_loops)
    # TODO(synk): a block-sparse / VMEM-resident adjacency path would remove the
    # remaining O(L*N^2) HBM traffic for very large graphs (int8/fp8 A_hat on
    # v6e/v7x respectively is a further 2x on that stream).
    for i in range(num_layers):
        h = pallas_gcn_layer(a_hat, h, params["gnn_w"][i].astype(jnp.bfloat16),
                             params["gnn_b"][i], relu=(i < num_layers - 1),
                             tm=tm_n, tk=tk_n, vmem_limit=vmem)

    # --- decoder: gather stays JAX glue on this path ---
    # TODO(synk): fuse the gather via scalar-prefetched indices for large graphs
    # (the fused small-graph path already gathers in-kernel).
    src_p = jnp.pad(edge_index[0], (0, e_pad - E))
    dst_p = jnp.pad(edge_index[1], (0, e_pad - E))
    z = jnp.concatenate([h[src_p], h[dst_p], e_enc], axis=-1)  # (E_pad, 3*H_pad)
    dec1_w = params["dec1_w"].reshape(3 * h_pad, h_pad).astype(jnp.bfloat16)
    out = pallas_edge_mlp(z, dec1_w, params["dec1_b"],
                          params["dec2_wt"].astype(jnp.bfloat16),
                          params["dec2_bs"], vmem_limit=vmem)
    return out[0, :E].reshape(E, 1)


# =============================================================================
# JAX glue: adjacency, params, dispatch, reference
# =============================================================================

def dense_gcn_adjacency(edge_index, edge_weight, num_nodes, n_pad, dtype, *,
                        normalize, add_self_loops):
    """Dense A_hat matching PyG GCNConv's gcn_norm (flow source->target),
    built directly at padded shape and final dtype (no extra pad/cast pass)."""
    src = edge_index[0]
    dst = edge_index[1]
    w = edge_weight.astype(jnp.float32)
    if add_self_loops:
        loop = jnp.arange(num_nodes, dtype=edge_index.dtype)
        src = jnp.concatenate([src, loop])
        dst = jnp.concatenate([dst, loop])
        w = jnp.concatenate([w, jnp.ones((num_nodes,), jnp.float32)])
    if normalize:
        deg = jnp.zeros((num_nodes,), jnp.float32).at[dst].add(w)
        dinv = jnp.where(deg > 0, jax.lax.rsqrt(deg), 0.0)
        w = dinv[src] * w * dinv[dst]
    return jnp.zeros((n_pad, n_pad), dtype).at[dst, src].add(w.astype(dtype))


def init_params(key, node_feature_dim, edge_feature_dim, hidden_dim,
                num_gnn_layers):
    """nn.Linear-style init, stored f32 at lane-dense padded shapes."""
    assert num_gnn_layers >= 1
    h_pad = _round_up(hidden_dim, LANE)
    fn_pad = _round_up(node_feature_dim, LANE)
    fe_pad = _round_up(edge_feature_dim, LANE)

    def raw_lin(k, fan_in, fan_out):
        kw, kb = jax.random.split(k)
        lim = 1.0 / (fan_in ** 0.5)
        w = jax.random.uniform(kw, (fan_in, fan_out), jnp.float32, -lim, lim)
        b = jax.random.uniform(kb, (1, fan_out), jnp.float32, -lim, lim)
        return w, b

    keys = jax.random.split(key, 4 + num_gnn_layers)
    p = {}
    w, b = raw_lin(keys[0], node_feature_dim, hidden_dim)
    p["node_w"], p["node_b"] = _pad2d(w, fn_pad, h_pad), _pad2d(b, 1, h_pad)
    w, b = raw_lin(keys[1], edge_feature_dim, hidden_dim)
    p["edge_w"], p["edge_b"] = _pad2d(w, fe_pad, h_pad), _pad2d(b, 1, h_pad)

    gws, gbs = [], []
    for i in range(num_gnn_layers):
        w, b = raw_lin(keys[2 + i], hidden_dim, hidden_dim)
        gws.append(_pad2d(w, h_pad, h_pad))
        gbs.append(_pad2d(b, 1, h_pad))
    p["gnn_w"] = jnp.stack(gws)          # (L, H_pad, H_pad)
    p["gnn_b"] = jnp.stack(gbs)          # (L, 1, H_pad)

    # Decoder layer 1 consumes [h_src | h_dst | e_enc]; keep the three row
    # blocks separate so the fused kernel can do concat-free matmuls.
    w1, b1 = raw_lin(keys[2 + num_gnn_layers], 3 * hidden_dim, hidden_dim)
    blocks = jnp.split(w1, 3, axis=0)
    p["dec1_w"] = jnp.stack([_pad2d(blk, h_pad, h_pad) for blk in blocks])
    p["dec1_b"] = _pad2d(b1, 1, h_pad)

    w2, b2 = raw_lin(keys[3 + num_gnn_layers], hidden_dim, 1)
    p["dec2_wt"] = _pad2d(w2.T, 8, h_pad)   # row 0 = w2^T (lane-dense output form)
    p["dec2_bs"] = b2                        # (1, 1)
    return p


def gcn_forward(params, x, edge_index, edge_attr, edge_weight, *,
                normalize=True, add_self_loops=None):
    # PyG GCNConv: add_self_loops=None defaults to `normalize`.
    if add_self_loops is None:
        add_self_loops = normalize

    cfg = _hw_config()
    N = x.shape[0]
    E = edge_index.shape[1]
    fn_pad = params["node_w"].shape[0]
    fe_pad = params["edge_w"].shape[0]
    h_pad = params["node_w"].shape[1]
    num_layers = int(params["gnn_w"].shape[0])

    n_pad_f = _round_up(max(N, 8), LANE)
    e_pad_f = _round_up(max(E, 8), TE)

    if _fused_vmem_bytes(n_pad_f, fn_pad, fe_pad, h_pad,
                         num_layers) <= cfg["fused_budget"]:
        return _forward_fused(params, x, edge_index, edge_attr, edge_weight,
                              n_pad_f, e_pad_f, normalize, add_self_loops,
                              cfg["vmem_limit"])
    return _forward_tiled(params, x, edge_index, edge_attr, edge_weight, cfg,
                          normalize, add_self_loops)


def _reference_forward(params, x, edge_index, edge_attr, edge_weight,
                       normalize, add_self_loops):
    """Plain-JAX f32 reference with identical semantics (for self-check)."""
    N = x.shape[0]
    E = edge_index.shape[1]
    fn_pad = params["node_w"].shape[0]
    fe_pad = params["edge_w"].shape[0]
    x_p = _pad2d(x.astype(jnp.float32), N, fn_pad)
    ea_p = _pad2d(edge_attr.astype(jnp.float32), E, fe_pad)
    a = dense_gcn_adjacency(edge_index, edge_weight, N, N, jnp.float32,
                            normalize=normalize, add_self_loops=add_self_loops)
    h = x_p @ params["node_w"] + params["node_b"]
    num_layers = int(params["gnn_w"].shape[0])
    for i in range(num_layers):
        h = a @ (h @ params["gnn_w"][i]) + params["gnn_b"][i]
        if i < num_layers - 1:
            h = jnp.maximum(h, 0.0)
    e_enc = ea_p @ params["edge_w"] + params["edge_b"]
    hs, hd = h[edge_index[0]], h[edge_index[1]]
    z1 = (hs @ params["dec1_w"][0] + hd @ params["dec1_w"][1]
          + e_enc @ params["dec1_w"][2] + params["dec1_b"])
    h1 = jnp.maximum(z1, 0.0)
    return h1 @ params["dec2_wt"][0:1, :].T + params["dec2_bs"]


# ----------------------------------- main ----------------------------------- #

if __name__ == "__main__":
    node_feature_dim = 6
    edge_feature_dim = 4
    hidden_dim = 32
    num_gnn_layers = 2
    N, E = 16, 40

    key = jax.random.PRNGKey(0)
    k1, k2, k3, k4, kp = jax.random.split(key, 5)
    x = jax.random.normal(k1, (N, node_feature_dim), jnp.float32)
    edge_index = jax.random.randint(k2, (2, E), 0, N, dtype=jnp.int32)
    edge_attr = jax.random.normal(k3, (E, edge_feature_dim), jnp.float32)
    edge_weight = jax.random.uniform(k4, (E,), jnp.float32, 0.1, 1.0)

    params = init_params(kp, node_feature_dim, edge_feature_dim,
                         hidden_dim, num_gnn_layers)

    # fully fused single-kernel path (selected automatically at this size)
    out = gcn_forward(params, x, edge_index, edge_attr, edge_weight,
                      normalize=True, add_self_loops=True)
    out = jax.block_until_ready(out)
    assert out.shape == (E, 1)

    ref = _reference_forward(params, x, edge_index, edge_attr, edge_weight,
                             True, True)
    ref = jax.block_until_ready(ref)
    err_fused = float(jnp.max(jnp.abs(out - ref)))
    assert err_fused < 2e-1, f"fused path mismatch: max abs err {err_fused}"

    # also exercise the general tiled fall-back path (bf16 MXU inputs)
    out_tiled = _forward_tiled(params, x, edge_index, edge_attr, edge_weight,
                               _hw_config(), True, True)
    out_tiled = jax.block_until_ready(out_tiled)
    assert out_tiled.shape == (E, 1)
    err_tiled = float(jnp.max(jnp.abs(out_tiled - ref)))
    assert err_tiled < 4e-1, f"tiled path mismatch: max abs err {err_tiled}"

    print("KERNEL_OK")
</pallas_src>

<mosaic_0001>
module attributes {stable_mosaic.version = 11 : i64} {
  func.func @_fused_forward_kernel(%arg0: i32, %arg1: memref<128x128xf32, #tpu.memory_space<vmem>>, %arg2: memref<128x128xf32, #tpu.memory_space<vmem>>, %arg3: memref<128x128xf32, #tpu.memory_space<vmem>>, %arg4: memref<1x128xf32, #tpu.memory_space<vmem>>, %arg5: memref<2x128x128xf32, #tpu.memory_space<vmem>>, %arg6: memref<2x1x128xf32, #tpu.memory_space<vmem>>, %arg7: memref<128x128xf32, #tpu.memory_space<vmem>>, %arg8: memref<128x128xf32, #tpu.memory_space<vmem>>, %arg9: memref<1x128xf32, #tpu.memory_space<vmem>>, %arg10: memref<128x1xi32, #tpu.memory_space<vmem>>, %arg11: memref<128x1xi32, #tpu.memory_space<vmem>>, %arg12: memref<3x128x128xf32, #tpu.memory_space<vmem>>, %arg13: memref<1x128xf32, #tpu.memory_space<vmem>>, %arg14: memref<8x128xf32, #tpu.memory_space<vmem>>, %arg15: memref<1x1xf32, #tpu.memory_space<vmem>>, %arg16: memref<1x128xf32, #tpu.memory_space<vmem>>, %arg17: memref<128x128xf32, #tpu.memory_space<vmem>>) attributes {dimension_semantics = [#tpu.dimension_semantics<arbitrary>], iteration_bounds = array<i64: 1>, scalar_prefetch = 0 : i64, scratch_operands = 1 : i64, tpu.core_type = #tpu.core_type<tc>, window_params = [{pipeline_mode = #tpu.pipeline_mode<synchronous>, transform_indices = @transform_0, window_bounds = array<i64: 128, 128>}, {pipeline_mode = #tpu.pipeline_mode<synchronous>, transform_indices = @transform_1, window_bounds = array<i64: 128, 128>}, {pipeline_mode = #tpu.pipeline_mode<synchronous>, transform_indices = @transform_2, window_bounds = array<i64: 128, 128>}, {pipeline_mode = #tpu.pipeline_mode<synchronous>, transform_indices = @transform_3, window_bounds = array<i64: 1, 128>}, {pipeline_mode = #tpu.pipeline_mode<synchronous>, transform_indices = @transform_4, window_bounds = array<i64: 2, 128, 128>}, {pipeline_mode = #tpu.pipeline_mode<synchronous>, transform_indices = @transform_5, window_bounds = array<i64: 2, 1, 128>}, {transform_indices = @transform_6, window_bounds = array<i64: 128, 128>}, {pipeline_mode = #tpu.pipeline_mode<synchronous>, transform_indices = @transform_7, window_bounds = array<i64: 128, 128>}, {pipeline_mode = #tpu.pipeline_mode<synchronous>, transform_indices = @transform_8, window_bounds = array<i64: 1, 128>}, {transform_indices = @transform_9, window_bounds = array<i64: 128, 1>}, {transform_indices = @transform_10, window_bounds = array<i64: 128, 1>}, {pipeline_mode = #tpu.pipeline_mode<synchronous>, transform_indices = @transform_11, window_bounds = array<i64: 3, 128, 128>}, {pipeline_mode = #tpu.pipeline_mode<synchronous>, transform_indices = @transform_12, window_bounds = array<i64: 1, 128>}, {pipeline_mode = #tpu.pipeline_mode<synchronous>, transform_indices = @transform_13, window_bounds = array<i64: 8, 128>}, {pipeline_mode = #tpu.pipeline_mode<synchronous>, transform_indices = @transform_14, window_bounds = array<i64: 1, 1>}, {transform_indices = @transform_15, window_bounds = array<i64: 1, 128>}]} {
    %c0_i32 = arith.constant 0 : i32
    %0 = arith.cmpi eq, %arg0, %c0_i32 : i32
    %1 = arith.extui %0 : i1 to i32
    %c0_i32_0 = arith.constant 0 : i32
    %2 = arith.cmpi ne, %1, %c0_i32_0 : i32
    scf.if %2 {
      %c0_34 = arith.constant 0 : index
      %c0_35 = arith.constant 0 : index
      %46 = vector.load %arg1[%c0_34, %c0_35] : memref<128x128xf32, #tpu.memory_space<vmem>>, vector<128x128xf32>
      %c0_36 = arith.constant 0 : index
      %c0_37 = arith.constant 0 : index
      %47 = vector.load %arg3[%c0_36, %c0_37] : memref<128x128xf32, #tpu.memory_space<vmem>>, vector<128x128xf32>
      %cst_38 = arith.constant dense<0.000000e+00> : vector<128x128xf32>
      %48 = tpu.matmul %46, %47, %cst_38 {dimension_numbers = #tpu.dot_dimension_numbers<[1], [0], [0], [1], [0, 0, 1, 1], [], []>} : vector<128x128xf32>, vector<128x128xf32>, vector<128x128xf32> -> vector<128x128xf32>
      %c0_39 = arith.constant 0 : index
      %c0_40 = arith.constant 0 : index
      %49 = vector.load %arg4[%c0_39, %c0_40] : memref<1x128xf32, #tpu.memory_space<vmem>>, vector<1x128xf32>
      %50 = vector.broadcast %49 : vector<1x128xf32> to vector<128x128xf32>
      %51 = arith.addf %48, %50 : vector<128x128xf32>
      %c0_41 = arith.constant 0 : index
      %c0_42 = arith.constant 0 : index
      %c0_43 = arith.constant 0 : index
      %52 = vector.load %arg5[%c0_41, %c0_42, %c0_43] : memref<2x128x128xf32, #tpu.memory_space<vmem>>, vector<1x128x128xf32>
      %53 = vector.shape_cast %52 : vector<1x128x128xf32> to vector<128x128xf32>
      %cst_44 = arith.constant dense<0.000000e+00> : vector<128x128xf32>
      %54 = tpu.matmul %51, %53, %cst_44 {dimension_numbers = #tpu.dot_dimension_numbers<[1], [0], [0], [1], [0, 0, 1, 1], [], []>} : vector<128x128xf32>, vector<128x128xf32>, vector<128x128xf32> -> vector<128x128xf32>
      %c0_45 = arith.constant 0 : index
      %c0_46 = arith.constant 0 : index
      %55 = vector.load %arg2[%c0_45, %c0_46] : memref<128x128xf32, #tpu.memory_space<vmem>>, vector<128x128xf32>
      %cst_47 = arith.constant dense<0.000000e+00> : vector<128x128xf32>
      %56 = tpu.matmul %55, %54, %cst_47 {dimension_numbers = #tpu.dot_dimension_numbers<[1], [0], [0], [1], [0, 0, 1, 1], [], []>} : vector<128x128xf32>, vector<128x128xf32>, vector<128x128xf32> -> vector<128x128xf32>
      %c0_48 = arith.constant 0 : index
      %c0_49 = arith.constant 0 : index
      %c0_50 = arith.constant 0 : index
      %57 = vector.load %arg6[%c0_48, %c0_49, %c0_50] : memref<2x1x128xf32, #tpu.memory_space<vmem>>, vector<1x1x128xf32>
      %58 = vector.shape_cast %57 : vector<1x1x128xf32> to vector<1x128xf32>
      %59 = vector.broadcast %58 : vector<1x128xf32> to vector<128x128xf32>
      %60 = arith.addf %56, %59 : vector<128x128xf32>
      %cst_51 = arith.constant 0.000000e+00 : f32
      %61 = vector.broadcast %cst_51 : f32 to vector<128x128xf32>
      %62 = arith.maximumf %60, %61 : vector<128x128xf32>
      %c1_52 = arith.constant 1 : index
      %c0_53 = arith.constant 0 : index
      %c0_54 = arith.constant 0 : index
      %63 = vector.load %arg5[%c1_52, %c0_53, %c0_54] : memref<2x128x128xf32, #tpu.memory_space<vmem>>, vector<1x128x128xf32>
      %64 = vector.shape_cast %63 : vector<1x128x128xf32> to vector<128x128xf32>
      %cst_55 = arith.constant dense<0.000000e+00> : vector<128x128xf32>
      %65 = tpu.matmul %62, %64, %cst_55 {dimension_numbers = #tpu.dot_dimension_numbers<[1], [0], [0], [1], [0, 0, 1, 1], [], []>} : vector<128x128xf32>, vector<128x128xf32>, vector<128x128xf32> -> vector<128x128xf32>
      %c0_56 = arith.constant 0 : index
      %c0_57 = arith.constant 0 : index
      %66 = vector.load %arg2[%c0_56, %c0_57] : memref<128x128xf32, #tpu.memory_space<vmem>>, vector<128x128xf32>
      %cst_58 = arith.constant dense<0.000000e+00> : vector<128x128xf32>
      %67 = tpu.matmul %66, %65, %cst_58 {dimension_numbers = #tpu.dot_dimension_numbers<[1], [0], [0], [1], [0, 0, 1, 1], [], []>} : vector<128x128xf32>, vector<128x128xf32>, vector<128x128xf32> -> vector<128x128xf32>
      %c1_59 = arith.constant 1 : index
      %c0_60 = arith.constant 0 : index
      %c0_61 = arith.constant 0 : index
      %68 = vector.load %arg6[%c1_59, %c0_60, %c0_61] : memref<2x1x128xf32, #tpu.memory_space<vmem>>, vector<1x1x128xf32>
      %69 = vector.shape_cast %68 : vector<1x1x128xf32> to vector<1x128xf32>
      %70 = vector.broadcast %69 : vector<1x128xf32> to vector<128x128xf32>
      %71 = arith.addf %67, %70 : vector<128x128xf32>
      %c0_62 = arith.constant 0 : index
      %c0_63 = arith.constant 0 : index
      %72 = vector.load %arg17[%c0_62, %c0_63] : memref<128x128xf32, #tpu.memory_space<vmem>>, vector<128x128xf32>
      tpu.vector_store %arg17[%c0_62, %c0_63], %71 {strides = array<i32>} : memref<128x128xf32, #tpu.memory_space<vmem>>, vector<128x128xf32>,
    } else {
    }
    %c0 = arith.constant 0 : index
    %c0_1 = arith.constant 0 : index
    %3 = vector.load %arg7[%c0, %c0_1] : memref<128x128xf32, #tpu.memory_space<vmem>>, vector<128x128xf32>
    %c0_2 = arith.constant 0 : index
    %c0_3 = arith.constant 0 : index
    %4 = vector.load %arg8[%c0_2, %c0_3] : memref<128x128xf32, #tpu.memory_space<vmem>>, vector<128x128xf32>
    %cst = arith.constant dense<0.000000e+00> : vector<128x128xf32>
    %5 = tpu.matmul %3, %4, %cst {dimension_numbers = #tpu.dot_dimension_numbers<[1], [0], [0], [1], [0, 0, 1, 1], [], []>} : vector<128x128xf32>, vector<128x128xf32>, vector<128x128xf32> -> vector<128x128xf32>
    %c0_4 = arith.constant 0 : index
    %c0_5 = arith.constant 0 : index
    %6 = vector.load %arg9[%c0_4, %c0_5] : memref<1x128xf32, #tpu.memory_space<vmem>>, vector<1x128xf32>
    %7 = vector.broadcast %6 : vector<1x128xf32> to vector<128x128xf32>
    %8 = arith.addf %5, %7 : vector<128x128xf32>
    %9 = tpu.iota {dimensions = array<i32: 1>} : vector<128x128xi32>
    %c0_6 = arith.constant 0 : index
    %c0_7 = arith.constant 0 : index
    %10 = vector.load %arg10[%c0_6, %c0_7] : memref<128x1xi32, #tpu.memory_space<vmem>>, vector<128x1xi32>
    %11 = vector.broadcast %10 : vector<128x1xi32> to vector<128x128xi32>
    %12 = arith.cmpi eq, %9, %11 : vector<128x128xi32>
    %13 = arith.extui %12 : vector<128x128xi1> to vector<128x128xi32>
    %14 = arith.sitofp %13 : vector<128x128xi32> to vector<128x128xf32>
    %c0_8 = arith.constant 0 : index
    %c0_9 = arith.constant 0 : index
    %15 = vector.load %arg11[%c0_8, %c0_9] : memref<128x1xi32, #tpu.memory_space<vmem>>, vector<128x1xi32>
    %16 = vector.broadcast %15 : vector<128x1xi32> to vector<128x128xi32>
    %17 = arith.cmpi eq, %9, %16 : vector<128x128xi32>
    %18 = arith.extui %17 : vector<128x128xi1> to vector<128x128xi32>
    %19 = arith.sitofp %18 : vector<128x128xi32> to vector<128x128xf32>
    %c0_10 = arith.constant 0 : index
    %c0_11 = arith.constant 0 : index
    %20 = vector.load %arg17[%c0_10, %c0_11] : memref<128x128xf32, #tpu.memory_space<vmem>>, vector<128x128xf32>
    %cst_12 = arith.constant dense<0.000000e+00> : vector<128x128xf32>
    %21 = tpu.matmul %14, %20, %cst_12 {dimension_numbers = #tpu.dot_dimension_numbers<[1], [0], [0], [1], [0, 0, 1, 1], [], []>} : vector<128x128xf32>, vector<128x128xf32>, vector<128x128xf32> -> vector<128x128xf32>
    %cst_13 = arith.constant dense<0.000000e+00> : vector<128x128xf32>
    %22 = tpu.matmul %19, %20, %cst_13 {dimension_numbers = #tpu.dot_dimension_numbers<[1], [0], [0], [1], [0, 0, 1, 1], [], []>} : vector<128x128xf32>, vector<128x128xf32>, vector<128x128xf32> -> vector<128x128xf32>
    %c0_14 = arith.constant 0 : index
    %c0_15 = arith.constant 0 : index
    %c0_16 = arith.constant 0 : index
    %23 = vector.load %arg12[%c0_14, %c0_15, %c0_16] : memref<3x128x128xf32, #tpu.memory_space<vmem>>, vector<1x128x128xf32>
    %24 = vector.shape_cast %23 : vector<1x128x128xf32> to vector<128x128xf32>
    %cst_17 = arith.constant dense<0.000000e+00> : vector<128x128xf32>
    %25 = tpu.matmul %21, %24, %cst_17 {dimension_numbers = #tpu.dot_dimension_numbers<[1], [0], [0], [1], [0, 0, 1, 1], [], []>} : vector<128x128xf32>, vector<128x128xf32>, vector<128x128xf32> -> vector<128x128xf32>
    %c1 = arith.constant 1 : index
    %c0_18 = arith.constant 0 : index
    %c0_19 = arith.constant 0 : index
    %26 = vector.load %arg12[%c1, %c0_18, %c0_19] : memref<3x128x128xf32, #tpu.memory_space<vmem>>, vector<1x128x128xf32>
    %27 = vector.shape_cast %26 : vector<1x128x128xf32> to vector<128x128xf32>
    %cst_20 = arith.constant dense<0.000000e+00> : vector<128x128xf32>
    %28 = tpu.matmul %22, %27, %cst_20 {dimension_numbers = #tpu.dot_dimension_numbers<[1], [0], [0], [1], [0, 0, 1, 1], [], []>} : vector<128x128xf32>, vector<128x128xf32>, vector<128x128xf32> -> vector<128x128xf32>
    %29 = arith.addf %25, %28 : vector<128x128xf32>
    %c2 = arith.constant 2 : index
    %c0_21 = arith.constant 0 : index
    %c0_22 = arith.constant 0 : index
    %30 = vector.load %arg12[%c2, %c0_21, %c0_22] : memref<3x128x128xf32, #tpu.memory_space<vmem>>, vector<1x128x128xf32>
    %31 = vector.shape_cast %30 : vector<1x128x128xf32> to vector<128x128xf32>
    %cst_23 = arith.constant dense<0.000000e+00> : vector<128x128xf32>
    %32 = tpu.matmul %8, %31, %cst_23 {dimension_numbers = #tpu.dot_dimension_numbers<[1], [0], [0], [1], [0, 0, 1, 1], [], []>} : vector<128x128xf32>, vector<128x128xf32>, vector<128x128xf32> -> vector<128x128xf32>
    %33 = arith.addf %29, %32 : vector<128x128xf32>
    %c0_24 = arith.constant 0 : index
    %c0_25 = arith.constant 0 : index
    %34 = vector.load %arg13[%c0_24, %c0_25] : memref<1x128xf32, #tpu.memory_space<vmem>>, vector<1x128xf32>
    %35 = vector.broadcast %34 : vector<1x128xf32> to vector<128x128xf32>
    %36 = arith.addf %33, %35 : vector<128x128xf32>
    %cst_26 = arith.constant 0.000000e+00 : f32
    %37 = vector.broadcast %cst_26 : f32 to vector<128x128xf32>
    %38 = arith.maximumf %36, %37 : vector<128x128xf32>
    %c0_27 = arith.constant 0 : index
    %c0_28 = arith.constant 0 : index
    %39 = vector.load %arg14[%c0_27, %c0_28] : memref<8x128xf32, #tpu.memory_space<vmem>>, vector<8x128xf32>
    %cst_29 = arith.constant dense<0.000000e+00> : vector<8x128xf32>
    %40 = tpu.matmul %39, %38, %cst_29 {dimension_numbers = #tpu.dot_dimension_numbers<[1], [1], [0], [0], [0, 0, 1, 0], [], []>} : vector<8x128xf32>, vector<128x128xf32>, vector<8x128xf32> -> vector<8x128xf32>
    %41 = vector.extract_strided_slice %40 {offsets = [0, 0], sizes = [1, 128], strides = [1, 1]} : vector<8x128xf32> to vector<1x128xf32>
    %c0_30 = arith.constant 0 : index
    %c0_31 = arith.constant 0 : index
    %42 = vector.load %arg15[%c0_30, %c0_31] : memref<1x1xf32, #tpu.memory_space<vmem>>, vector<1x1xf32>
    %43 = vector.broadcast %42 : vector<1x1xf32> to vector<1x128xf32>
    %44 = arith.addf %41, %43 : vector<1x128xf32>
    %c0_32 = arith.constant 0 : index
    %c0_33 = arith.constant 0 : index
    %45 = vector.load %arg16[%c0_32, %c0_33] : memref<1x128xf32, #tpu.memory_space<vmem>>, vector<1x128xf32>
    tpu.vector_store %arg16[%c0_32, %c0_33], %44 {strides = array<i32>} : memref<1x128xf32, #tpu.memory_space<vmem>>, vector<1x128xf32>,
    return
  }
  func.func @transform_0(%arg0: i32) -> (i32, i32) {
    %c0_i32 = arith.constant 0 : i32
    %c0_i32_0 = arith.constant 0 : i32
    %c0_i32_1 = arith.constant 0 : i32
    return %c0_i32, %c0_i32_0 : i32, i32
  }
  func.func @transform_1(%arg0: i32) -> (i32, i32) {
    %c0_i32 = arith.constant 0 : i32
    %c0_i32_0 = arith.constant 0 : i32
    %c0_i32_1 = arith.constant 0 : i32
    return %c0_i32, %c0_i32_0 : i32, i32
  }
  func.func @transform_2(%arg0: i32) -> (i32, i32) {
    %c0_i32 = arith.constant 0 : i32
    %c0_i32_0 = arith.constant 0 : i32
    %c0_i32_1 = arith.constant 0 : i32
    return %c0_i32, %c0_i32_0 : i32, i32
  }
  func.func @transform_3(%arg0: i32) -> (i32, i32) {
    %c0_i32 = arith.constant 0 : i32
    %c0_i32_0 = arith.constant 0 : i32
    %c0_i32_1 = arith.constant 0 : i32
    return %c0_i32, %c0_i32_0 : i32, i32
  }
  func.func @transform_4(%arg0: i32) -> (i32, i32, i32) {
    %c0_i32 = arith.constant 0 : i32
    %c0_i32_0 = arith.constant 0 : i32
    %c0_i32_1 = arith.constant 0 : i32
    %c0_i32_2 = arith.constant 0 : i32
    return %c0_i32, %c0_i32_0, %c0_i32_1 : i32, i32, i32
  }
  func.func @transform_5(%arg0: i32) -> (i32, i32, i32) {
    %c0_i32 = arith.constant 0 : i32
    %c0_i32_0 = arith.constant 0 : i32
    %c0_i32_1 = arith.constant 0 : i32
    %c0_i32_2 = arith.constant 0 : i32
    return %c0_i32, %c0_i32_0, %c0_i32_1 : i32, i32, i32
  }
  func.func @transform_6(%arg0: i32) -> (i32, i32) {
    %c0_i32 = arith.constant 0 : i32
    %c0_i32_0 = arith.constant 0 : i32
    return %arg0, %c0_i32 : i32, i32
  }
  func.func @transform_7(%arg0: i32) -> (i32, i32) {
    %c0_i32 = arith.constant 0 : i32
    %c0_i32_0 = arith.constant 0 : i32
    %c0_i32_1 = arith.constant 0 : i32
    return %c0_i32, %c0_i32_0 : i32, i32
  }
  func.func @transform_8(%arg0: i32) -> (i32, i32) {
    %c0_i32 = arith.constant 0 : i32
    %c0_i32_0 = arith.constant 0 : i32
    %c0_i32_1 = arith.constant 0 : i32
    return %c0_i32, %c0_i32_0 : i32, i32
  }
  func.func @transform_9(%arg0: i32) -> (i32, i32) {
    %c0_i32 = arith.constant 0 : i32
    %c0_i32_0 = arith.constant 0 : i32
    return %arg0, %c0_i32 : i32, i32
  }
  func.func @transform_10(%arg0: i32) -> (i32, i32) {
    %c0_i32 = arith.constant 0 : i32
    %c0_i32_0 = arith.constant 0 : i32
    return %arg0, %c0_i32 : i32, i32
  }
  func.func @transform_11(%arg0: i32) -> (i32, i32, i32) {
    %c0_i32 = arith.constant 0 : i32
    %c0_i32_0 = arith.constant 0 : i32
    %c0_i32_1 = arith.constant 0 : i32
    %c0_i32_2 = arith.constant 0 : i32
    return %c0_i32, %c0_i32_0, %c0_i32_1 : i32, i32, i32
  }
  func.func @transform_12(%arg0: i32) -> (i32, i32) {
    %c0_i32 = arith.constant 0 : i32
    %c0_i32_0 = arith.constant 0 : i32
    %c0_i32_1 = arith.constant 0 : i32
    return %c0_i32, %c0_i32_0 : i32, i32
  }
  func.func @transform_13(%arg0: i32) -> (i32, i32) {
    %c0_i32 = arith.constant 0 : i32
    %c0_i32_0 = arith.constant 0 : i32
    %c0_i32_1 = arith.constant 0 : i32
    return %c0_i32, %c0_i32_0 : i32, i32
  }
  func.func @transform_14(%arg0: i32) -> (i32, i32) {
    %c0_i32 = arith.constant 0 : i32
    %c0_i32_0 = arith.constant 0 : i32
    %c0_i32_1 = arith.constant 0 : i32
    return %c0_i32, %c0_i32_0 : i32, i32
  }
  func.func @transform_15(%arg0: i32) -> (i32, i32) {
    %c0_i32 = arith.constant 0 : i32
    %c0_i32_0 = arith.constant 0 : i32
    return %c0_i32, %arg0 : i32, i32
  }
}

</mosaic_0001>

<bundles_post_ra>
// kernel: tpu_custom_call.1
= control target key start
LH: loop header
LB: loop body
LE: loop exit
PB: predicated region body
PF: predicated region fallthrough
CT: control target
= control target key end

     0   :  { %s4946_s0 = inlined_call_operand.hbm [shape: f32[128,128], index: 0, kind: input, shape index: {}]   ;;  %s4947_s1 = inlined_call_operand.hbm [shape: f32[128,128], index: 1, kind: input, shape index: {}]   ;;  %s4948_s2 = inlined_call_operand.hbm [shape: f32[128,128], index: 2, kind: input, shape index: {}]   ;;  %s4949_s3 = inlined_call_operand.hbm [shape: f32[1,128], index: 3, kind: input, shape index: {}]   ;;  %s4950_s4 = inlined_call_operand.hbm [shape: f32[2,128,128], index: 4, kind: input, shape index: {}]   ;;  %s4951_s5 = inlined_call_operand.hbm [shape: f32[2,1,128], index: 5, kind: input, shape index: {}]   ;;  %s4952_s6 = inlined_call_operand.hbm [shape: f32[128,128], index: 6, kind: input, shape index: {}]   ;;  %s4953_s7 = inlined_call_operand.hbm [shape: f32[128,128], index: 7, kind: input, shape index: {}]   ;;  %s4954_s8 = inlined_call_operand.hbm [shape: f32[1,128], index: 8, kind: input, shape index: {}]   ;;  %s4955_s9 = inlined_call_operand.hbm [shape: s32[128,1], index: 9, kind: input, shape index: {}]   ;;  %s4956_s10 = inlined_call_operand.hbm [shape: s32[128,1], index: 10, kind: input, shape index: {}]   ;;  %s4957_s11 = inlined_call_operand.hbm [shape: f32[3,128,128], index: 11, kind: input, shape index: {}]   ;;  %s4958_s12 = inlined_call_operand.hbm [shape: f32[1,128], index: 12, kind: input, shape index: {}]   ;;  %s4959_s13 = inlined_call_operand.hbm [shape: f32[8,128], index: 13, kind: input, shape index: {}]   ;;  %s4960_s14 = inlined_call_operand.<no memory space> [shape: f32[1,1], index: 14, kind: input, shape index: {}]   ;;  %s4961_s15 = inlined_call_operand.hbm [shape: f32[1,128], index: 15, kind: output, shape index: {}]  }
   0x1   :  { %v20_v0 = vstv %s4960_s14 }
   0x2   :  { %21 = vst [vmem:[#allocation3] sm:$0x1] %v20_v0 }
   0x3   :  { %22 = vsyncpa [#allocation5], 0 }
   0x4   :  { %23 = vsyncpa [#allocation8], 0 }
   0x5   :  { %24 = vsyncpa [#allocation11], 0 }
   0x6   :  { %25 = vsyncpa [#allocation14], 0 }
   0x7   :  { %26 = vsyncpa [#allocation17], 0 }
   0x8   :  { %27 = vsyncpa [#allocation20], 0 }
   0x9   :  { %28 = vsyncpa [#allocation23], 0 }
   0xa   :  { %29 = vsyncpa [#allocation26], 0 }
   0xb   :  { %30 = vsyncpa [#allocation6], 0  ;;  %s4331_s20 = smov [#allocation7]   ;;  %s4332_s22 = smov [#allocation10]  }
   0xc   :  { %s48_s21 = sshll.u32 %s4331_s20, 4  ;;  %s73_s23 = sshll.u32 %s4332_s22, 4  ;;  %s49_s21 = int_to_ptr.vmem [resolvable:$true] %s48_s21  ;;  %s4438_s23 = int_to_ptr.vmem [resolvable:$true] %s73_s23 }
   0xd   :  { %s3983_s14 = scalar_lea.hbm %s4947_s1, 2048 }
   0xe   :  { %p3984_p0 = scmp.ne.s32.totalorder %s4947_s1, %s3983_s14  ;;  %p3987_p1 = scmp.lt.u32.totalorder %s3983_s14, %s4947_s1 }
  0x10   :  { %p3989_p2 = pnand %p3987_p1, %p3984_p0 }
  0x12   :  { %3992 = shalt.err (!%p3989_p2)
}
  0x13   :  { %s3993_s30 = scalar_lea.vmem %s49_s21, 2048  ;;  %p3998_p4 = scmp.lt.s32.totalorder %s49_s21, %s49_s21 }
  0x14   :  { %p3994_p3 = scmp.ne.s32.totalorder %s49_s21, %s3993_s30  ;;  %p3999_p5 = scmp.lt.s32.totalorder %s3993_s30, %s3993_s30 }
  0x16   :  { %p4000_p6 = por %p3999_p5, %p3998_p4 }
  0x18   :  { %p4001_p7 = pnand %p4000_p6, %p3994_p3 }
  0x1a   :  { %4004 = shalt.err (!%p4001_p7)
}
  0x1b   :  { %s4333_s16 = smov 128   ;;  %s4334_s17 = smov 8  }
  0x1c   :  { %54 = dma.hbm_to_vmem [thread:$0]  %s4947_s1, 2048, %s49_s21, [#allocation8], %s4333_s16, %s4333_s16, %s4334_s17  }
  0x1d   :  { %s4005_s24 = scalar_lea.hbm %s4949_s3, 16 }
  0x1e   :  { %p4006_p8 = scmp.ne.s32.totalorder %s4949_s3, %s4005_s24  ;;  %p4009_p9 = scmp.lt.u32.totalorder %s4005_s24, %s4949_s3 }
  0x20   :  { %p4011_p10 = pnand %p4009_p9, %p4006_p8 }
  0x22   :  { %4014 = shalt.err (!%p4011_p10)
}
  0x23   :  { %s4015_s28 = scalar_lea.vmem %s4438_s23, 16  ;;  %s4019_s1 = scalar_lea.vmem %s4438_s23, 32 }
  0x24   :  { %p4016_p11 = scmp.ne.s32.totalorder %s4438_s23, %s4015_s28  ;;  %p4020_p12 = scmp.lt.s32.totalorder %s4438_s23, %s4438_s23 }
  0x25   :  { %p4021_p13 = scmp.lt.s32.totalorder %s4019_s1, %s4015_s28 }
  0x27   :  { %p4022_p0 = por %p4021_p13, %p4020_p12 }
  0x29   :  { %p4023_p1 = pnand %p4022_p0, %p4016_p11 }
  0x2b   :  { %4026 = shalt.err (!%p4023_p1)
}
  0x2c   :  { %76 = dma.hbm_to_vmem [thread:$0]  %s4949_s3, 16, %s4438_s23, [#allocation11]  }
  0x2d   :  { %s4335_s30 = smov [#allocation13]   ;;  %s4027_s22 = scalar_lea.hbm %s4951_s5, 32 }
  0x2e   :  { %s94_s18 = sshll.u32 %s4335_s30, 4  ;;  %p4028_p2 = scmp.ne.s32.totalorder %s4951_s5, %s4027_s22  ;;  %s95_s18 = int_to_ptr.vmem [resolvable:$true] %s94_s18 }
  0x2f   :  { %p4031_p3 = scmp.lt.u32.totalorder %s4027_s22, %s4951_s5 }
  0x31   :  { %p4033_p4 = pnand %p4031_p3, %p4028_p2 }
  0x33   :  { %4036 = shalt.err (!%p4033_p4)
}
  0x34   :  { %s4037_s27 = scalar_lea.vmem %s95_s18, 32  ;;  %p4042_p6 = scmp.lt.s32.totalorder %s95_s18, %s95_s18 }
  0x35   :  { %p4038_p5 = scmp.ne.s32.totalorder %s95_s18, %s4037_s27  ;;  %p4043_p7 = scmp.lt.s32.totalorder %s4037_s27, %s4037_s27 }
  0x37   :  { %p4044_p8 = por %p4043_p7, %p4042_p6 }
  0x39   :  { %p4045_p9 = pnand %p4044_p8, %p4038_p5 }
  0x3b   :  { %4048 = shalt.err (!%p4045_p9)
}
  0x3c   :  { %s4336_s3 = smov 16   ;;  %s4337_s23 = smov 1  }
  0x3d   :  { %100 = dma.hbm_to_vmem [thread:$0]  %s4951_s5, 32, %s95_s18, [#allocation14], %s4336_s3, %s4336_s3, %s4337_s23  }
  0x3e   :  { %s4338_s21 = smov [#allocation16]   ;;  %s4339_s30 = smov [#allocation19]  }
  0x3f   :  { %s118_s29 = sshll.u32 %s4338_s21, 4  ;;  %s140_s19 = sshll.u32 %s4339_s30, 4  ;;  %s119_s29 = int_to_ptr.vmem [resolvable:$true] %s118_s29  ;;  %s141_s19 = int_to_ptr.vmem [resolvable:$true] %s140_s19 }
  0x40   :  { %s4049_s24 = scalar_lea.hbm %s4953_s7, 2048 }
  0x41   :  { %p4050_p10 = scmp.ne.s32.totalorder %s4953_s7, %s4049_s24  ;;  %p4053_p11 = scmp.lt.u32.totalorder %s4049_s24, %s4953_s7 }
  0x43   :  { %p4055_p12 = pnand %p4053_p11, %p4050_p10 }
  0x45   :  { %4058 = shalt.err (!%p4055_p12)
}
  0x46   :  { %s4059_s5 = scalar_lea.vmem %s119_s29, 2048  ;;  %p4064_p0 = scmp.lt.s32.totalorder %s119_s29, %s119_s29 }
  0x47   :  { %p4060_p13 = scmp.ne.s32.totalorder %s119_s29, %s4059_s5  ;;  %p4065_p1 = scmp.lt.s32.totalorder %s4059_s5, %s4059_s5 }
  0x49   :  { %p4066_p2 = por %p4065_p1, %p4064_p0 }
  0x4b   :  { %p4067_p3 = pnand %p4066_p2, %p4060_p13 }
  0x4d   :  { %4070 = shalt.err (!%p4067_p3)
}
  0x4e   :  { %124 = dma.hbm_to_vmem [thread:$0]  %s4953_s7, 2048, %s119_s29, [#allocation17], %s4333_s16, %s4333_s16, %s4334_s17  }
  0x4f   :  { %s4071_s1 = scalar_lea.hbm %s4955_s9, 2048 }
  0x50   :  { %p4072_p4 = scmp.ne.s32.totalorder %s4955_s9, %s4071_s1  ;;  %p4075_p5 = scmp.lt.u32.totalorder %s4071_s1, %s4955_s9 }
  0x52   :  { %p4077_p6 = pnand %p4075_p5, %p4072_p4 }
  0x54   :  { %4080 = shalt.err (!%p4077_p6)
}
  0x55   :  { %s4081_s24 = scalar_lea.vmem %s141_s19, 2048  ;;  %p4086_p8 = scmp.lt.s32.totalorder %s141_s19, %s141_s19 }
  0x56   :  { %p4082_p7 = scmp.ne.s32.totalorder %s141_s19, %s4081_s24  ;;  %p4087_p9 = scmp.lt.s32.totalorder %s4081_s24, %s4081_s24 }
  0x58   :  { %p4088_p10 = por %p4087_p9, %p4086_p8 }
  0x5a   :  { %p4089_p11 = pnand %p4088_p10, %p4082_p7 }
  0x5c   :  { %4092 = shalt.err (!%p4089_p11)
}
  0x5d   :  { %146 = dma.hbm_to_vmem [thread:$0]  %s4955_s9, 2048, %s141_s19, [#allocation20], %s4333_s16, %s4333_s16, %s4334_s17  }
  0x5e   :  { %s4340_s25 = smov [#allocation22]   ;;  %s4341_s26 = smov [#allocation4]  }
  0x5f   :  { %s164_s14 = sshll.u32 %s4340_s25, 4  ;;  %s36_s27 = sshll.u32 %s4341_s26, 4  ;;  %s165_s14 = int_to_ptr.vmem [resolvable:$true] %s164_s14  ;;  %s37_s27 = int_to_ptr.vmem [resolvable:$true] %s36_s27 }
  0x60   :  { %s4093_s3 = scalar_lea.hbm %s4957_s11, 6144 }
  0x61   :  { %p4094_p12 = scmp.ne.s32.totalorder %s4957_s11, %s4093_s3  ;;  %p4097_p13 = scmp.lt.u32.totalorder %s4093_s3, %s4957_s11 }
  0x63   :  { %p4099_p0 = pnand %p4097_p13, %p4094_p12 }
  0x65   :  { %4102 = shalt.err (!%p4099_p0)
}
  0x66   :  { %s4103_s9 = scalar_lea.vmem %s165_s14, 6144  ;;  %p4108_p2 = scmp.lt.s32.totalorder %s165_s14, %s165_s14 }
  0x67   :  { %p4104_p1 = scmp.ne.s32.totalorder %s165_s14, %s4103_s9  ;;  %p4109_p3 = scmp.lt.s32.totalorder %s4103_s9, %s4103_s9 }
  0x69   :  { %p4110_p4 = por %p4109_p3, %p4108_p2 }
  0x6b   :  { %p4111_p5 = pnand %p4110_p4, %p4104_p1 }
  0x6d   :  { %4114 = shalt.err (!%p4111_p5)
}
  0x6e   :  { %170 = dma.hbm_to_vmem [thread:$0]  %s4957_s11, 6144, %s165_s14, [#allocation23], %s4333_s16, %s4333_s16, %s4334_s17  }
  0x6f   :  { %s4115_s24 = scalar_lea.hbm %s4946_s0, 2048 }
  0x70   :  { %p4116_p6 = scmp.ne.s32.totalorder %s4946_s0, %s4115_s24  ;;  %p4119_p7 = scmp.lt.u32.totalorder %s4115_s24, %s4946_s0 }
  0x72   :  { %p4121_p8 = pnand %p4119_p7, %p4116_p6 }
  0x74   :  { %4124 = shalt.err (!%p4121_p8)
}
  0x75   :  { %s4125_s5 = scalar_lea.vmem %s37_s27, 2048  ;;  %p4130_p10 = scmp.lt.s32.totalorder %s37_s27, %s37_s27 }
  0x76   :  { %p4126_p9 = scmp.ne.s32.totalorder %s37_s27, %s4125_s5  ;;  %p4131_p11 = scmp.lt.s32.totalorder %s4125_s5, %s4125_s5 }
  0x78   :  { %p4132_p12 = por %p4131_p11, %p4130_p10 }
  0x7a   :  { %p4133_p13 = pnand %p4132_p12, %p4126_p9 }
  0x7c   :  { %4136 = shalt.err (!%p4133_p13)
}
  0x7d   :  { %42 = dma.hbm_to_vmem [thread:$0]  %s4946_s0, 2048, %s37_s27, [#allocation5], %s4333_s16, %s4333_s16, %s4334_s17  }
  0x7e   :  { %s4342_s18 = smov [#allocation9]   ;;  %s4343_s23 = smov [#allocation12]  }
  0x7f   :  { %s60_s3 = sshll.u32 %s4342_s18, 4  ;;  %s82_s28 = sshll.u32 %s4343_s23, 4  ;;  %s61_s3 = int_to_ptr.vmem [resolvable:$true] %s60_s3  ;;  %s83_s28 = int_to_ptr.vmem [resolvable:$true] %s82_s28 }
  0x80   :  { %s4137_s9 = scalar_lea.hbm %s4948_s2, 2048 }
  0x81   :  { %p4138_p0 = scmp.ne.s32.totalorder %s4948_s2, %s4137_s9  ;;  %p4141_p1 = scmp.lt.u32.totalorder %s4137_s9, %s4948_s2 }
  0x83   :  { %p4143_p2 = pnand %p4141_p1, %p4138_p0 }
  0x85   :  { %4146 = shalt.err (!%p4143_p2)
}
  0x86   :  { %s4147_s0 = scalar_lea.vmem %s61_s3, 2048  ;;  %p4152_p4 = scmp.lt.s32.totalorder %s61_s3, %s61_s3 }
  0x87   :  { %p4148_p3 = scmp.ne.s32.totalorder %s61_s3, %s4147_s0  ;;  %p4153_p5 = scmp.lt.s32.totalorder %s4147_s0, %s4147_s0 }
  0x89   :  { %p4154_p6 = por %p4153_p5, %p4152_p4 }
  0x8b   :  { %p4155_p7 = pnand %p4154_p6, %p4148_p3 }
  0x8d   :  { %4158 = shalt.err (!%p4155_p7)
}
  0x8e   :  { %66 = dma.hbm_to_vmem [thread:$0]  %s4948_s2, 2048, %s61_s3, [#allocation8], %s4333_s16, %s4333_s16, %s4334_s17  }
  0x8f   :  { %s4159_s25 = scalar_lea.hbm %s4950_s4, 4096 }
  0x90   :  { %p4160_p8 = scmp.ne.s32.totalorder %s4950_s4, %s4159_s25  ;;  %p4163_p9 = scmp.lt.u32.totalorder %s4159_s25, %s4950_s4 }
  0x92   :  { %p4165_p10 = pnand %p4163_p9, %p4160_p8 }
  0x94   :  { %4168 = shalt.err (!%p4165_p10)
}
  0x95   :  { %s4169_s18 = scalar_lea.vmem %s83_s28, 4096  ;;  %p4174_p12 = scmp.lt.s32.totalorder %s83_s28, %s83_s28 }
  0x96   :  { %p4170_p11 = scmp.ne.s32.totalorder %s83_s28, %s4169_s18  ;;  %p4175_p13 = scmp.lt.s32.totalorder %s4169_s18, %s4169_s18 }
  0x98   :  { %p4176_p0 = por %p4175_p13, %p4174_p12 }
  0x9a   :  { %p4177_p1 = pnand %p4176_p0, %p4170_p11 }
  0x9c   :  { %4180 = shalt.err (!%p4177_p1)
}
  0x9d   :  { %88 = dma.hbm_to_vmem [thread:$0]  %s4950_s4, 4096, %s83_s28, [#allocation11], %s4333_s16, %s4333_s16, %s4334_s17  }
  0x9e   :  { %s4344_s23 = smov [#allocation15]   ;;  %s4345_s21 = smov [#allocation18]  }
  0x9f   :  { %s106_s1 = sshll.u32 %s4344_s23, 4  ;;  %s131_s9 = sshll.u32 %s4345_s21, 4  ;;  %s107_s1 = int_to_ptr.vmem [resolvable:$true] %s106_s1  ;;  %s132_s9 = int_to_ptr.vmem [resolvable:$true] %s131_s9 }
  0xa0   :  { %s4181_s20 = scalar_lea.hbm %s4952_s6, 2048 }
  0xa1   :  { %p4182_p2 = scmp.ne.s32.totalorder %s4952_s6, %s4181_s20  ;;  %p4185_p3 = scmp.lt.u32.totalorder %s4181_s20, %s4952_s6 }
  0xa3   :  { %p4187_p4 = pnand %p4185_p3, %p4182_p2 }
  0xa5   :  { %4190 = shalt.err (!%p4187_p4)
}
  0xa6   :  { %s4191_s4 = scalar_lea.vmem %s107_s1, 2048  ;;  %p4196_p6 = scmp.lt.s32.totalorder %s107_s1, %s107_s1 }
  0xa7   :  { %p4192_p5 = scmp.ne.s32.totalorder %s107_s1, %s4191_s4  ;;  %p4197_p7 = scmp.lt.s32.totalorder %s4191_s4, %s4191_s4 }
  0xa9   :  { %p4198_p8 = por %p4197_p7, %p4196_p6 }
  0xab   :  { %p4199_p9 = pnand %p4198_p8, %p4192_p5 }
  0xad   :  { %4202 = shalt.err (!%p4199_p9)
}
  0xae   :  { %112 = dma.hbm_to_vmem [thread:$0]  %s4952_s6, 2048, %s107_s1, [#allocation14], %s4333_s16, %s4333_s16, %s4334_s17  }
  0xaf   :  { %s4203_s26 = scalar_lea.hbm %s4954_s8, 16 }
  0xb0   :  { %p4204_p10 = scmp.ne.s32.totalorder %s4954_s8, %s4203_s26  ;;  %p4207_p11 = scmp.lt.u32.totalorder %s4203_s26, %s4954_s8 }
  0xb2   :  { %p4209_p12 = pnand %p4207_p11, %p4204_p10 }
  0xb4   :  { %4212 = shalt.err (!%p4209_p12)
}
  0xb5   :  { %s4213_s2 = scalar_lea.vmem %s132_s9, 16  ;;  %s4217_s3 = scalar_lea.vmem %s132_s9, 32 }
  0xb6   :  { %p4214_p13 = scmp.ne.s32.totalorder %s132_s9, %s4213_s2  ;;  %p4218_p0 = scmp.lt.s32.totalorder %s132_s9, %s132_s9 }
  0xb7   :  { %p4219_p1 = scmp.lt.s32.totalorder %s4217_s3, %s4213_s2 }
  0xb9   :  { %p4220_p2 = por %p4219_p1, %p4218_p0 }
  0xbb   :  { %p4221_p3 = pnand %p4220_p2, %p4214_p13 }
  0xbd   :  { %4224 = shalt.err (!%p4221_p3)
}
  0xbe   :  { %134 = dma.hbm_to_vmem [thread:$0]  %s4954_s8, 16, %s132_s9, [#allocation17]  }
  0xbf   :  { %s4346_s1 = smov [#allocation21]   ;;  %s4347_s19 = smov [#allocation24]  }
  0xc0   :  { %s152_s21 = sshll.u32 %s4346_s1, 4  ;;  %s177_s30 = sshll.u32 %s4347_s19, 4  ;;  %s153_s21 = int_to_ptr.vmem [resolvable:$true] %s152_s21  ;;  %s178_s30 = int_to_ptr.vmem [resolvable:$true] %s177_s30 }
  0xc1   :  { %s4225_s0 = scalar_lea.hbm %s4956_s10, 2048 }
  0xc2   :  { %p4226_p4 = scmp.ne.s32.totalorder %s4956_s10, %s4225_s0  ;;  %p4229_p5 = scmp.lt.u32.totalorder %s4225_s0, %s4956_s10 }
  0xc4   :  { %p4231_p6 = pnand %p4229_p5, %p4226_p4 }
  0xc6   :  { %4234 = shalt.err (!%p4231_p6)
}
  0xc7   :  { %s4235_s8 = scalar_lea.vmem %s153_s21, 2048  ;;  %p4240_p8 = scmp.lt.s32.totalorder %s153_s21, %s153_s21 }
  0xc8   :  { %p4236_p7 = scmp.ne.s32.totalorder %s153_s21, %s4235_s8  ;;  %p4241_p9 = scmp.lt.s32.totalorder %s4235_s8, %s4235_s8 }
  0xca   :  { %p4242_p10 = por %p4241_p9, %p4240_p8 }
  0xcc   :  { %p4243_p11 = pnand %p4242_p10, %p4236_p7 }
  0xce   :  { %4246 = shalt.err (!%p4243_p11)
}
  0xcf   :  { %158 = dma.hbm_to_vmem [thread:$0]  %s4956_s10, 2048, %s153_s21, [#allocation20], %s4333_s16, %s4333_s16, %s4334_s17  }
  0xd0   :  { %s4247_s26 = scalar_lea.hbm %s4958_s12, 16 }
  0xd1   :  { %p4248_p12 = scmp.ne.s32.totalorder %s4958_s12, %s4247_s26  ;;  %p4251_p13 = scmp.lt.u32.totalorder %s4247_s26, %s4958_s12 }
  0xd3   :  { %p4253_p0 = pnand %p4251_p13, %p4248_p12 }
  0xd5   :  { %4256 = shalt.err (!%p4253_p0)
}
  0xd6   :  { %s4257_s2 = scalar_lea.vmem %s178_s30, 16  ;;  %s4261_s3 = scalar_lea.vmem %s178_s30, 32 }
  0xd7   :  { %p4258_p1 = scmp.ne.s32.totalorder %s178_s30, %s4257_s2  ;;  %p4262_p2 = scmp.lt.s32.totalorder %s178_s30, %s178_s30 }
  0xd8   :  { %p4263_p3 = scmp.lt.s32.totalorder %s4261_s3, %s4257_s2 }
  0xda   :  { %p4264_p4 = por %p4263_p3, %p4262_p2 }
  0xdc   :  { %p4265_p5 = pnand %p4264_p4, %p4258_p1 }
  0xde   :  { %4268 = shalt.err (!%p4265_p5)
}
  0xdf   :  { %180 = dma.hbm_to_vmem [thread:$0]  %s4958_s12, 16, %s178_s30, [#allocation23]  }
  0xe0   :  { %s4348_s17 = smov [#allocation25]   ;;  %s4269_s21 = scalar_lea.hbm %s4959_s13, 128 }
  0xe1   :  { %s187_s6 = sshll.u32 %s4348_s17, 4  ;;  %p4270_p6 = scmp.ne.s32.totalorder %s4959_s13, %s4269_s21  ;;  %s188_s6 = int_to_ptr.vmem [resolvable:$true] %s187_s6 }
  0xe2   :  { %p4273_p7 = scmp.lt.u32.totalorder %s4269_s21, %s4959_s13 }
  0xe4   :  { %p4275_p8 = pnand %p4273_p7, %p4270_p6 }
  0xe6   :  { %4278 = shalt.err (!%p4275_p8)
}
  0xe7   :  { %s4279_s27 = scalar_lea.vmem %s188_s6, 128  ;;  %p4284_p10 = scmp.lt.s32.totalorder %s188_s6, %s188_s6 }
  0xe8   :  { %p4280_p9 = scmp.ne.s32.totalorder %s188_s6, %s4279_s27  ;;  %p4285_p11 = scmp.lt.s32.totalorder %s4279_s27, %s4279_s27 }
  0xea   :  { %p4286_p12 = por %p4285_p11, %p4284_p10 }
  0xec   :  { %p4287_p13 = pnand %p4286_p12, %p4280_p9 }
  0xee   :  { %4290 = shalt.err (!%p4287_p13)
}
  0xef   :  { %190 = dma.hbm_to_vmem [thread:$0]  %s4959_s13, 128, %s188_s6, [#allocation26]  }
  0xf0   :  { %4313 = dma.done.wait [#allocation5], 2048  }
  0xf1   :  { %4314 = vsyncadd [#allocation5], 4294965248 }
  0xf2   :  { %4315 = dma.done.wait [#allocation8], 4096  }
  0xf3   :  { %4316 = vsyncadd [#allocation8], 4294963200 }
  0xf4   :  { %4317 = dma.done.wait [#allocation11], 4112  }
  0xf5   :  { %4318 = vsyncadd [#allocation11], 4294963184 }
  0xf6   :  { %4319 = dma.done.wait [#allocation14], 2080  }
  0xf7   :  { %4320 = vsyncadd [#allocation14], 4294965216 }
  0xf8   :  { %4321 = dma.done.wait [#allocation17], 2064  }
  0xf9   :  { %4322 = vsyncadd [#allocation17], 4294965232 }
  0xfa   :  { %4323 = dma.done.wait [#allocation20], 4096  }
  0xfb   :  { %4324 = vsyncadd [#allocation20], 4294963200 }
  0xfc   :  { %4325 = dma.done.wait [#allocation23], 6160  }
  0xfd   :  { %4326 = vsyncadd [#allocation23], 4294961136 }
  0xfe   :  { %4327 = dma.done.wait [#allocation26], 128  }
  0xff   :  { %4328 = vsyncadd [#allocation26], 4294967168  ;;  %v255_v1 = vld [vmem:[#allocation9] sm:$0xff]  ;;  %v256_v2 = vld [vmem:[#allocation9 + $0x8] sm:$0xff]  ;;  %s4354_s13 = smov [#allocation27]  }
 0x100   :  { %v257_v3 = vld [vmem:[#allocation9 + $0x10] sm:$0xff]  ;;  %v3549_v4 = vpack.c.bf16 %v256_v2, %v255_v1  ;;  %v258_v5 = vld [vmem:[#allocation9 + $0x18] sm:$0xff]  ;;  %v259_v7 = vld [vmem:[#allocation9 + $0x20] sm:$0xff]  ;;  %s2444_s24 = sshll.u32 %s4354_s13, 4  ;;  %s2445_s24 = int_to_ptr.vmem [resolvable:$true] %s2444_s24 }
 0x101   :  { %v3553_v6 = vpack.c.bf16 %v258_v5, %v257_v3  ;;  %v260_v8 = vld [vmem:[#allocation9 + $0x28] sm:$0xff]  ;;  %v239_v10 = vld [vmem:[#allocation4] sm:$0xff]  ;;  %v261_v11 = vld [vmem:[#allocation9 + $0x30] sm:$0xff]  ;;  %s4291_s4 = scalar_lea.vmem %s2445_s24, 16  ;;  %s4295_s28 = scalar_lea.vmem %s2445_s24, 32 }
 0x102   :  { %3550 = vmatprep.subr.bf16.mxu1 %v3549_v4  ;;  %v3557_v9 = vpack.c.bf16 %v260_v8, %v259_v7  ;;  %v262_v12 = vld [vmem:[#allocation9 + $0x38] sm:$0xff]  ;;  %2930 = vmatprep.mubr.f32.mxu1 %v239_v10  ;;  %v263_v14 = vld [vmem:[#allocation9 + $0x40] sm:$0xff]  ;;  %v264_v15 = vld [vmem:[#allocation9 + $0x48] sm:$0xff]  ;;  %p4292_p0 = scmp.ne.s32.totalorder %s2445_s24, %s4291_s4  ;;  %p4296_p1 = scmp.lt.s32.totalorder %s2445_s24, %s2445_s24 }
 0x103   :  { %3552 = vmatpush3.bf16.msra.mxu1 %v3549_v4  ;;  %v3561_v13 = vpack.c.bf16 %v262_v12, %v261_v11  ;;  %v3565_v16 = vpack.c.bf16 %v264_v15, %v263_v14  ;;  %v265_v17 = vld [vmem:[#allocation9 + $0x50] sm:$0xff]  ;;  %v266_v18 = vld [vmem:[#allocation9 + $0x58] sm:$0xff]  ;;  %v267_v20 = vld [vmem:[#allocation9 + $0x60] sm:$0xff]  ;;  %p4297_p2 = scmp.lt.s32.totalorder %s4295_s28, %s4291_s4 }
 0x104   :  { %3554 = vmatprep.subr.bf16.mxu1 %v3553_v6  ;;  %v3569_v19 = vpack.c.bf16 %v266_v18, %v265_v17  ;;  %v268_v21 = vld [vmem:[#allocation9 + $0x68] sm:$0xff]  ;;  %v269_v23 = vld [vmem:[#allocation9 + $0x70] sm:$0xff]  ;;  %v270_v24 = vld [vmem:[#allocation9 + $0x78] sm:$0xff] }
 0x105   :  { %v3573_v22 = vpack.c.bf16 %v268_v21, %v267_v20  ;;  %v3577_v25 = vpack.c.bf16 %v270_v24, %v269_v23  ;;  %v423_v26 = vld [vmem:[#allocation12] sm:$0xff]  ;;  %v424_v27 = vld [vmem:[#allocation12 + $0x8] sm:$0xff]  ;;  %v425_v29 = vld [vmem:[#allocation12 + $0x10] sm:$0xff]  ;;  %p4298_p3 = por %p4297_p2, %p4296_p1 }
 0x106   :  { %v3581_v28 = vpack.c.bf16 %v424_v27, %v423_v26  ;;  %v426_v30 = vld [vmem:[#allocation12 + $0x18] sm:$0xff]  ;;  %v240_v31 = vld [vmem:[#allocation4 + $0x8] sm:$0xff]  ;;  %v241_v32 = vld [vmem:[#allocation4 + $0x10] sm:$0xff] }
 0x107   :  { %3556 = vmatpush3.bf16.msra.mxu1 %v3553_v6  ;;  %v3585_v33 = vpack.c.bf16 %v426_v30, %v425_v29  ;;  %v427_v34 = vld [vmem:[#allocation12 + $0x20] sm:$0xff]  ;;  %v428_v35 = vld [vmem:[#allocation12 + $0x28] sm:$0xff]  ;;  %v242_v36 = vld [vmem:[#allocation4 + $0x18] sm:$0xff]  ;;  %p4299_p4 = pnand %p4298_p3, %p4292_p0 }
 0x108   :  { %3558 = vmatprep.subr.bf16.mxu1 %v3557_v9  ;;  %v243_v37 = vld [vmem:[#allocation4 + $0x20] sm:$0xff]  ;;  %v3589_v38 = vpack.c.bf16 %v428_v35, %v427_v34  ;;  %v429_v39 = vld [vmem:[#allocation12 + $0x30] sm:$0xff]  ;;  %v244_v41 = vld [vmem:[#allocation4 + $0x28] sm:$0xff] }
 0x109   :  { %v430_v40 = vld [vmem:[#allocation12 + $0x38] sm:$0xff]  ;;  %v245_v42 = vld [vmem:[#allocation4 + $0x30] sm:$0xff]  ;;  %v431_v44 = vld [vmem:[#allocation12 + $0x40] sm:$0xff] }
 0x10a   :  { %v3593_v43 = vpack.c.bf16 %v430_v40, %v429_v39  ;;  %v432_v45 = vld [vmem:[#allocation12 + $0x48] sm:$0xff]  ;;  %v246_v46 = vld [vmem:[#allocation4 + $0x38] sm:$0xff]  ;;  %v247_v47 = vld [vmem:[#allocation4 + $0x40] sm:$0xff] }
 0x10b   :  { %3560 = vmatpush3.bf16.msra.mxu1 %v3557_v9  ;;  %v3597_v48 = vpack.c.bf16 %v432_v45, %v431_v44  ;;  %v433_v49 = vld [vmem:[#allocation12 + $0x50] sm:$0xff]  ;;  %v434_v50 = vld [vmem:[#allocation12 + $0x58] sm:$0xff]  ;;  %v248_v51 = vld [vmem:[#allocation4 + $0x48] sm:$0xff] }
 0x10c   :  { %3562 = vmatprep.subr.bf16.mxu1 %v3561_v13  ;;  %v249_v52 = vld [vmem:[#allocation4 + $0x50] sm:$0xff]  ;;  %v3601_v53 = vpack.c.bf16 %v434_v50, %v433_v49  ;;  %v435_v54 = vld [vmem:[#allocation12 + $0x60] sm:$0xff]  ;;  %v250_v56 = vld [vmem:[#allocation4 + $0x58] sm:$0xff] }
 0x10d   :  { %v436_v55 = vld [vmem:[#allocation12 + $0x68] sm:$0xff]  ;;  %v251_v57 = vld [vmem:[#allocation4 + $0x60] sm:$0xff]  ;;  %v254_v61 = vld [vmem:[#allocation4 + $0x78] sm:$0xff] }
 0x10e   :  { %v3605_v58 = vpack.c.bf16 %v436_v55, %v435_v54  ;;  %v252_v59 = vld [vmem:[#allocation4 + $0x68] sm:$0xff]  ;;  %v253_v60 = vld [vmem:[#allocation4 + $0x70] sm:$0xff]  ;;  %v438_v63 = vld [vmem:[#allocation12 + $0x78] sm:$0xff] }
 0x10f   :  { %3564 = vmatpush3.bf16.msra.mxu1 %v3561_v13  ;;  %v437_v62 = vld [vmem:[#allocation12 + $0x70] sm:$0xff]  ;;  %v2460_v1 = vld [vmem:[#allocation10] ss:$0 sm:$0xff]  ;;  %v769_v35 = vld [vmem:[#allocation12 + $0x80] sm:$0xff] }
 0x110   :  { %3566 = vmatprep.subr.bf16.mxu1 %v3565_v16  ;;  %v3609_v0 = vpack.c.bf16 %v438_v63, %v437_v62  ;;  %v4641_v34 = vld [vmem:[#allocation7] sm:$0xff]  ;;  %v775_v44 = vld [vmem:[#allocation12 + $0xb0] sm:$0xff]  ;;  %v782_v54 = vld [vmem:[#allocation12 + $0xe8] sm:$0xff] }
 0x111   :  { %3042 = vmatprep.mubr.f32.mxu0 %v4641_v34  ;;  %v772_v39 = vld [vmem:[#allocation12 + $0x98] sm:$0xff]  ;;  %v779_v50 = vld [vmem:[#allocation12 + $0xd0] sm:$0xff] }
 0x112   :  { %v776_v45 = vld [vmem:[#allocation12 + $0xb8] sm:$0xff] }
 0x113   :  { %3568 = vmatpush3.bf16.msra.mxu1 %v3565_v16 }
 0x114   :  { %3570 = vmatprep.subr.bf16.mxu1 %v3569_v19 }
 0x117   :  { %3572 = vmatpush3.bf16.msra.mxu1 %v3569_v19 }
 0x118   :  { %3574 = vmatprep.subr.bf16.mxu1 %v3573_v22 }
 0x11b   :  { %3576 = vmatpush3.bf16.msra.mxu1 %v3573_v22 }
 0x11c   :  { %3578 = vmatprep.subr.bf16.mxu1 %v3577_v25 }
 0x11f   :  { %3580 = vmatpush3.bf16.msra.mxu1 %v3577_v25 }
 0x120   :  { %3582 = vmatprep.subr.bf16.mxu1 %v3581_v28 }
 0x122   :  { %2931 = vmatmul.mubr.f32.vlgmr.msra.gmra.mrb[0].mxu1 %v240_v31 }
 0x123   :  { %2933 = vmatprep.mubr.f32.mxu1 %v241_v32  ;;  %3584 = vmatpush3.bf16.msra.mxu1 %v3581_v28 }
 0x124   :  { %3586 = vmatprep.subr.bf16.mxu1 %v3585_v33 }
 0x126   :  { %2934 = vmatmul.mubr.f32.gmra.mrb[2].mxu1 %v242_v36  ;;  %v770_v36 = vld [vmem:[#allocation12 + $0x88] sm:$0xff] }
 0x127   :  { %2936 = vmatprep.mubr.f32.mxu1 %v243_v37  ;;  %3588 = vmatpush3.bf16.msra.mxu1 %v3585_v33  ;;  %v771_v37 = vld [vmem:[#allocation12 + $0x90] sm:$0xff] }
 0x128   :  { %3590 = vmatprep.subr.bf16.mxu1 %v3589_v38  ;;  %v3649_v40 = vpack.c.bf16 %v772_v39, %v771_v37 }
 0x12a   :  { %2937 = vmatmul.mubr.f32.gmra.mrb[4].mxu1 %v244_v41  ;;  %v773_v41 = vld [vmem:[#allocation12 + $0xa0] sm:$0xff] }
 0x12b   :  { %2939 = vmatprep.mubr.f32.mxu1 %v245_v42  ;;  %3592 = vmatpush3.bf16.msra.mxu1 %v3589_v38  ;;  %v3645_v38 = vpack.c.bf16 %v770_v36, %v769_v35  ;;  %v774_v42 = vld [vmem:[#allocation12 + $0xa8] sm:$0xff]  ;;  %v2461_v35 = vld [vmem:[#allocation13] ss:$0 sm:$0xff] }
 0x12c   :  { %3594 = vmatprep.subr.bf16.mxu1 %v3593_v43 }
 0x12e   :  { %2940 = vmatmul.mubr.f32.gmra.mrb[6].mxu1 %v246_v46  ;;  %v3657_v46 = vpack.c.bf16 %v776_v45, %v775_v44 }
 0x12f   :  { %2942 = vmatprep.mubr.f32.mxu1 %v247_v47  ;;  %3596 = vmatpush3.bf16.msra.mxu1 %v3593_v43  ;;  %v3653_v43 = vpack.c.bf16 %v774_v42, %v773_v41  ;;  %v777_v47 = vld [vmem:[#allocation12 + $0xc0] sm:$0xff] }
 0x130   :  { %3598 = vmatprep.subr.bf16.mxu1 %v3597_v48 }
 0x132   :  { %2943 = vmatmul.mubr.f32.gmra.mrb[8].mxu1 %v248_v51  ;;  %v780_v51 = vld [vmem:[#allocation12 + $0xd8] sm:$0xff] }
 0x133   :  { %2945 = vmatprep.mubr.f32.mxu1 %v249_v52  ;;  %3600 = vmatpush3.bf16.msra.mxu1 %v3597_v48  ;;  %v778_v48 = vld [vmem:[#allocation12 + $0xc8] sm:$0xff]  ;;  %v3665_v52 = vpack.c.bf16 %v780_v51, %v779_v50 }
 0x134   :  { %3602 = vmatprep.subr.bf16.mxu1 %v3601_v53  ;;  %v3661_v49 = vpack.c.bf16 %v778_v48, %v777_v47 }
 0x136   :  { %2946 = vmatmul.mubr.f32.gmra.mrb[10].mxu1 %v250_v56 }
 0x137   :  { %2948 = vmatprep.mubr.f32.mxu1 %v251_v57  ;;  %3604 = vmatpush3.bf16.msra.mxu1 %v3601_v53  ;;  %v781_v53 = vld [vmem:[#allocation12 + $0xe0] sm:$0xff] }
 0x138   :  { %3606 = vmatprep.subr.bf16.mxu1 %v3605_v58  ;;  %v3669_v55 = vpack.c.bf16 %v782_v54, %v781_v53 }
 0x13a   :  { %2949 = vmatmul.mubr.f32.gmra.mrb[12].mxu1 %v252_v59 }
 0x13b   :  { %2951 = vmatprep.mubr.f32.mxu1 %v253_v60  ;;  %3608 = vmatpush3.bf16.msra.mxu1 %v3605_v58 }
 0x13c   :  { %3610 = vmatprep.subr.bf16.mxu1 %v3609_v0 }
 0x13e   :  { %2952 = vmatmul.mubr.f32.gmra.mrb[14].mxu1 %v254_v61 }
 0x13f   :  { %3612 = vmatpush3.bf16.msra.mxu1 %v3609_v0 }
 0x140   :  { %3646 = vmatprep.subr.bf16.mxu1 %v3645_v38 }
 0x1f5   :  { %v2932_v2 = vpop.f32.mrb[0].mxu1 }
 0x1f6   :  { %v344_v3 = vpop.f32.mrb[1].mxu1  ;;  %v350_v5 = vadd.f32 %v2932_v2, %v2460_v1 }
 0x1f7   :  { %v345_v4 = vadd.f32 %v2460_v1, %v344_v3 }
 0x1f9   :  { %v2935_v6 = vpop.f32.mrb[2].mxu1  ;;  %2986 = vmatprep.mubr.f32.mxu1 %v345_v4 }
 0x1fa   :  { %v354_v7 = vpop.f32.mrb[3].mxu1  ;;  %2987 = vmatmul.mubr.f32.vlgmr.msra.gmra.mrb[16].mxu1 %v350_v5  ;;  %v360_v9 = vadd.f32 %v2935_v6, %v2460_v1 }
 0x1fb   :  { %v355_v8 = vadd.f32 %v2460_v1, %v354_v7  ;;  %3648 = vmatpush3.bf16.msra.mxu1 %v3645_v38 }
 0x1fc   :  { %3650 = vmatprep.subr.bf16.mxu1 %v3649_v40 }
 0x1fd   :  { %v2938_v10 = vpop.f32.mrb[4].mxu1  ;;  %2989 = vmatprep.mubr.f32.mxu1 %v355_v8 }
 0x1fe   :  { %v364_v11 = vpop.f32.mrb[5].mxu1  ;;  %2990 = vmatmul.mubr.f32.gmra.mrb[18].mxu1 %v360_v9  ;;  %v370_v13 = vadd.f32 %v2938_v10, %v2460_v1 }
 0x1ff   :  { %v365_v12 = vadd.f32 %v2460_v1, %v364_v11  ;;  %3652 = vmatpush3.bf16.msra.mxu1 %v3649_v40 }
 0x200   :  { %3654 = vmatprep.subr.bf16.mxu1 %v3653_v43 }
 0x201   :  { %v2941_v14 = vpop.f32.mrb[6].mxu1  ;;  %2992 = vmatprep.mubr.f32.mxu1 %v365_v12 }
 0x202   :  { %v374_v15 = vpop.f32.mrb[7].mxu1  ;;  %2993 = vmatmul.mubr.f32.gmra.mrb[20].mxu1 %v370_v13  ;;  %v380_v17 = vadd.f32 %v2941_v14, %v2460_v1 }
 0x203   :  { %v375_v16 = vadd.f32 %v2460_v1, %v374_v15  ;;  %3656 = vmatpush3.bf16.msra.mxu1 %v3653_v43 }
 0x204   :  { %3658 = vmatprep.subr.bf16.mxu1 %v3657_v46 }
 0x205   :  { %v2944_v18 = vpop.f32.mrb[8].mxu1  ;;  %2995 = vmatprep.mubr.f32.mxu1 %v375_v16  ;;  %v4644_v16 = vld [vmem:[#allocation7 + $0x8] sm:$0xff] }
 0x206   :  { %v384_v19 = vpop.f32.mrb[9].mxu1  ;;  %2996 = vmatmul.mubr.f32.gmra.mrb[22].mxu1 %v380_v17  ;;  %v390_v21 = vadd.f32 %v2944_v18, %v2460_v1  ;;  %v4646_v17 = vld [vmem:[#allocation7 + $0x10] sm:$0xff]  ;;  %v4650_v18 = vld [vmem:[#allocation7 + $0x18] sm:$0xff] }
 0x207   :  { %v385_v20 = vadd.f32 %v2460_v1, %v384_v19  ;;  %3660 = vmatpush3.bf16.msra.mxu1 %v3657_v46  ;;  %v4652_v19 = vld [vmem:[#allocation7 + $0x20] sm:$0xff] }
 0x208   :  { %3662 = vmatprep.subr.bf16.mxu1 %v3661_v49 }
 0x209   :  { %v2947_v22 = vpop.f32.mrb[10].mxu1  ;;  %2998 = vmatprep.mubr.f32.mxu1 %v385_v20  ;;  %v4656_v20 = vld [vmem:[#allocation7 + $0x28] sm:$0xff] }
 0x20a   :  { %v394_v23 = vpop.f32.mrb[11].mxu1  ;;  %2999 = vmatmul.mubr.f32.gmra.mrb[24].mxu1 %v390_v21  ;;  %v400_v25 = vadd.f32 %v2947_v22, %v2460_v1  ;;  %v4658_v21 = vld [vmem:[#allocation7 + $0x30] sm:$0xff]  ;;  %v4662_v22 = vld [vmem:[#allocation7 + $0x38] sm:$0xff] }
 0x20b   :  { %v395_v24 = vadd.f32 %v2460_v1, %v394_v23  ;;  %3664 = vmatpush3.bf16.msra.mxu1 %v3661_v49  ;;  %v4664_v23 = vld [vmem:[#allocation7 + $0x40] sm:$0xff] }
 0x20c   :  { %3666 = vmatprep.subr.bf16.mxu1 %v3665_v52 }
 0x20d   :  { %v2950_v26 = vpop.f32.mrb[12].mxu1  ;;  %3001 = vmatprep.mubr.f32.mxu1 %v395_v24  ;;  %v4668_v24 = vld [vmem:[#allocation7 + $0x48] sm:$0xff] }
 0x20e   :  { %v404_v27 = vpop.f32.mrb[13].mxu1  ;;  %3002 = vmatmul.mubr.f32.gmra.mrb[26].mxu1 %v400_v25  ;;  %v410_v29 = vadd.f32 %v2950_v26, %v2460_v1  ;;  %v4670_v25 = vld [vmem:[#allocation7 + $0x50] sm:$0xff]  ;;  %v4674_v26 = vld [vmem:[#allocation7 + $0x58] sm:$0xff] }
 0x20f   :  { %v405_v28 = vadd.f32 %v2460_v1, %v404_v27  ;;  %3668 = vmatpush3.bf16.msra.mxu1 %v3665_v52  ;;  %v4676_v27 = vld [vmem:[#allocation7 + $0x60] sm:$0xff] }
 0x210   :  { %3670 = vmatprep.subr.bf16.mxu1 %v3669_v55 }
 0x211   :  { %v2953_v30 = vpop.f32.mrb[14].mxu1  ;;  %3004 = vmatprep.mubr.f32.mxu1 %v405_v28  ;;  %v4680_v28 = vld [vmem:[#allocation7 + $0x68] sm:$0xff] }
 0x212   :  { %v414_v31 = vpop.f32.mrb[15].mxu1  ;;  %3005 = vmatmul.mubr.f32.gmra.mrb[28].mxu1 %v410_v29  ;;  %v420_v33 = vadd.f32 %v2953_v30, %v2460_v1  ;;  %v4682_v29 = vld [vmem:[#allocation7 + $0x70] sm:$0xff]  ;;  %v4686_v30 = vld [vmem:[#allocation7 + $0x78] sm:$0xff] }
 0x213   :  { %v415_v32 = vadd.f32 %v2460_v1, %v414_v31  ;;  %3672 = vmatpush3.bf16.msra.mxu1 %v3669_v55  ;;  %v783_v31 = vld [vmem:[#allocation12 + $0xf0] sm:$0xff] }
 0x215   :  { %3007 = vmatprep.mubr.f32.mxu1 %v415_v32  ;;  %v784_v32 = vld [vmem:[#allocation12 + $0xf8] sm:$0xff] }
 0x216   :  { %3008 = vmatmul.mubr.f32.gmra.mrb[30].mxu1 %v420_v33  ;;  %v3673_v33 = vpack.c.bf16 %v784_v32, %v783_v31 }
 0x218   :  { %3674 = vmatprep.subr.bf16.mxu1 %v3673_v33 }
 0x219   :  { %3676 = vmatpush3.bf16.msra.mxu1 %v3673_v33 }
 0x2cd   :  { %v2988_v56 = vpop.f32.mrb[16].mxu1 }
 0x2ce   :  { %v505_v57 = vpop.f32.mrb[17].mxu1 }
 0x2cf   :  { %v3613_v58 = vpack.c.bf16 %v2988_v56, %v505_v57 }
 0x2d1   :  { %v2991_v59 = vpop.f32.mrb[18].mxu1  ;;  %3614 = vmatprep.subr.bf16.mxu0 %v3613_v58 }
 0x2d2   :  { %v515_v60 = vpop.f32.mrb[19].mxu1  ;;  %3616 = vmatpush3.bf16.msra.mxu0 %v3613_v58 }
 0x2d3   :  { %v3617_v61 = vpack.c.bf16 %v2991_v59, %v515_v60 }
 0x2d5   :  { %v2994_v62 = vpop.f32.mrb[20].mxu1  ;;  %3618 = vmatprep.subr.bf16.mxu0 %v3617_v61 }
 0x2d6   :  { %v525_v63 = vpop.f32.mrb[21].mxu1  ;;  %3620 = vmatpush3.bf16.msra.mxu0 %v3617_v61 }
 0x2d7   :  { %v3621_v0 = vpack.c.bf16 %v2994_v62, %v525_v63 }
 0x2d9   :  { %v2997_v1 = vpop.f32.mrb[22].mxu1  ;;  %3622 = vmatprep.subr.bf16.mxu0 %v3621_v0 }
 0x2da   :  { %v535_v2 = vpop.f32.mrb[23].mxu1  ;;  %3624 = vmatpush3.bf16.msra.mxu0 %v3621_v0 }
 0x2db   :  { %v3625_v3 = vpack.c.bf16 %v2997_v1, %v535_v2 }
 0x2dd   :  { %v3000_v4 = vpop.f32.mrb[24].mxu1  ;;  %3626 = vmatprep.subr.bf16.mxu0 %v3625_v3 }
 0x2de   :  { %v545_v5 = vpop.f32.mrb[25].mxu1  ;;  %3628 = vmatpush3.bf16.msra.mxu0 %v3625_v3 }
 0x2df   :  { %v3629_v6 = vpack.c.bf16 %v3000_v4, %v545_v5 }
 0x2e1   :  { %v3003_v7 = vpop.f32.mrb[26].mxu1  ;;  %3630 = vmatprep.subr.bf16.mxu0 %v3629_v6 }
 0x2e2   :  { %v555_v8 = vpop.f32.mrb[27].mxu1  ;;  %3632 = vmatpush3.bf16.msra.mxu0 %v3629_v6 }
 0x2e3   :  { %v3633_v9 = vpack.c.bf16 %v3003_v7, %v555_v8 }
 0x2e5   :  { %v3006_v10 = vpop.f32.mrb[28].mxu1  ;;  %3634 = vmatprep.subr.bf16.mxu0 %v3633_v9 }
 0x2e6   :  { %v565_v11 = vpop.f32.mrb[29].mxu1  ;;  %3636 = vmatpush3.bf16.msra.mxu0 %v3633_v9 }
 0x2e7   :  { %v3637_v12 = vpack.c.bf16 %v3006_v10, %v565_v11 }
 0x2e9   :  { %v3009_v13 = vpop.f32.mrb[30].mxu1  ;;  %3638 = vmatprep.subr.bf16.mxu0 %v3637_v12 }
 0x2ea   :  { %v575_v14 = vpop.f32.mrb[31].mxu1  ;;  %3640 = vmatpush3.bf16.msra.mxu0 %v3637_v12 }
 0x2eb   :  { %v3641_v15 = vpack.c.bf16 %v3009_v13, %v575_v14 }
 0x2ed   :  { %3642 = vmatprep.subr.bf16.mxu0 %v3641_v15 }
 0x2ee   :  { %3644 = vmatpush3.bf16.msra.mxu0 %v3641_v15 }
 0x2f1   :  { %3043 = vmatmul.mubr.f32.vlgmr.msra.gmra.mrb[0].mxu0 %v4644_v16 }
 0x2f2   :  { %3045 = vmatprep.mubr.f32.mxu0 %v4646_v17 }
 0x2f5   :  { %3046 = vmatmul.mubr.f32.gmra.mrb[2].mxu0 %v4650_v18 }
 0x2f6   :  { %3048 = vmatprep.mubr.f32.mxu0 %v4652_v19 }
 0x2f9   :  { %3049 = vmatmul.mubr.f32.gmra.mrb[4].mxu0 %v4656_v20 }
 0x2fa   :  { %3051 = vmatprep.mubr.f32.mxu0 %v4658_v21 }
 0x2fd   :  { %3052 = vmatmul.mubr.f32.gmra.mrb[6].mxu0 %v4662_v22 }
 0x2fe   :  { %3054 = vmatprep.mubr.f32.mxu0 %v4664_v23 }
 0x301   :  { %3055 = vmatmul.mubr.f32.gmra.mrb[8].mxu0 %v4668_v24 }
 0x302   :  { %3057 = vmatprep.mubr.f32.mxu0 %v4670_v25 }
 0x305   :  { %3058 = vmatmul.mubr.f32.gmra.mrb[10].mxu0 %v4674_v26 }
 0x306   :  { %3060 = vmatprep.mubr.f32.mxu0 %v4676_v27 }
 0x309   :  { %3061 = vmatmul.mubr.f32.gmra.mrb[12].mxu0 %v4680_v28 }
 0x30a   :  { %3063 = vmatprep.mubr.f32.mxu0 %v4682_v29 }
 0x30d   :  { %3064 = vmatmul.mubr.f32.gmra.mrb[14].mxu0 %v4686_v30 }
 0x30e   :  { %3154 = vmatprep.mubr.f32.mxu0 %v4641_v34 }
 0x3c4   :  { %v3044_v36 = vpop.f32.mrb[0].mxu0 }
 0x3c5   :  { %v679_v37 = vadd.f32 %v3044_v36, %v2461_v35  ;;  %v673_v38 = vpop.f32.mrb[1].mxu0  ;;  %v1397_v36 = vld [vmem:[#allocation21] sm:$0xff] }
 0x3c6   :  { %v674_v39 = vadd.f32 %v2461_v35, %v673_v38  ;;  %v4349_v38 = vmov 0  }
 0x3c7   :  { %v753_v42 = vmax.f32 %v679_v37, 0.0  ;;  %v1399_v37 = vld [vmem:[#allocation21 + $0x10] sm:$0xff]  ;;  %3981 = vset.pattern.permute.xlu0 %v4349_v38  ;;  %3982 = vset.pattern.permute.xlu1 %v4349_v38  ;;  %v1298_v38 = vld [vmem:[#allocation19 + $0x68] sm:$0xff] }
 0x3c8   :  { %v752_v40 = vmax.f32 %v674_v39, 0.0  ;;  %v3047_v41 = vpop.f32.mrb[2].mxu0  ;;  %1414 = vperm.xlu0 %3981, %v1397_v36   ;;  %1420 = vperm.xlu1 %3982, %v1399_v37   ;;  %v1398_v39 = vld [vmem:[#allocation21 + $0x8] sm:$0xff]  ;;  %v1296_v36 = vld [vmem:[#allocation19 + $0x58] sm:$0xff]  ;;  %v1297_v37 = vld [vmem:[#allocation19 + $0x60] sm:$0xff] }
 0x3c9   :  { %v689_v43 = vadd.f32 %v3047_v41, %v2461_v35  ;;  %v683_v44 = vpop.f32.mrb[3].mxu0  ;;  %v1401_v41 = vld [vmem:[#allocation21 + $0x20] sm:$0xff] }
 0x3ca   :  { %v684_v45 = vadd.f32 %v2461_v35, %v683_v44  ;;  %3098 = vmatprep.mubr.f32.mxu1 %v752_v40  ;;  %v1400_v40 = vld [vmem:[#allocation21 + $0x18] sm:$0xff] }
 0x3cb   :  { %3099 = vmatmul.mubr.f32.vlgmr.msra.gmra.mrb[32].mxu1 %v753_v42  ;;  %v755_v47 = vmax.f32 %v689_v43, 0.0  ;;  %v1402_v42 = vld [vmem:[#allocation21 + $0x28] sm:$0xff]  ;;  %v1404_v43 = vld [vmem:[#allocation21 + $0x38] sm:$0xff] }
 0x3cc   :  { %v754_v46 = vmax.f32 %v684_v45, 0.0  ;;  %v3050_v34 = vpop.f32.mrb[4].mxu0  ;;  %1417 = vperm.xlu0 %3981, %v1398_v39   ;;  %1423 = vperm.xlu1 %3982, %v1400_v40   ;;  %v1115_v44 = vld [vmem:[#allocation16] sm:$0xff]  ;;  %v1116_v45 = vld [vmem:[#allocation16 + $0x8] sm:$0xff]  ;;  %v1299_v39 = vld [vmem:[#allocation19 + $0x70] sm:$0xff] }
 0x3cd   :  { %v699_v48 = vadd.f32 %v3050_v34, %v2461_v35  ;;  %v693_v49 = vpop.f32.mrb[5].mxu0  ;;  %v3709_v34 = vpack.c.bf16 %v1116_v45, %v1115_v44  ;;  %v1300_v40 = vld [vmem:[#allocation19 + $0x78] sm:$0xff] }
 0x3ce   :  { %v694_v50 = vadd.f32 %v2461_v35, %v693_v49  ;;  %3101 = vmatprep.mubr.f32.mxu1 %v754_v46  ;;  %v1117_v46 = vld [vmem:[#allocation16 + $0x10] sm:$0xff]  ;;  %v1119_v49 = vld [vmem:[#allocation16 + $0x20] sm:$0xff] }
 0x3cf   :  { %3102 = vmatmul.mubr.f32.gmra.mrb[34].mxu1 %v755_v47  ;;  %v757_v53 = vmax.f32 %v699_v48, 0.0  ;;  %v1118_v47 = vld [vmem:[#allocation16 + $0x18] sm:$0xff]  ;;  %3710 = vmatprep.subr.bf16.mxu1 %v3709_v34 }
 0x3d0   :  { %v756_v51 = vmax.f32 %v694_v50, 0.0  ;;  %v3053_v52 = vpop.f32.mrb[6].mxu0  ;;  %1426 = vperm.xlu0 %3981, %v1401_v41   ;;  %1429 = vperm.xlu1 %3982, %v1402_v42   ;;  %v3713_v48 = vpack.c.bf16 %v1118_v47, %v1117_v46  ;;  %v1120_v50 = vld [vmem:[#allocation16 + $0x28] sm:$0xff]  ;;  %v2426_v41 = vld [vmem:[#allocation3] sm:$0x1] }
 0x3d1   :  { %v709_v54 = vadd.f32 %v3053_v52, %v2461_v35  ;;  %v703_v55 = vpop.f32.mrb[7].mxu0  ;;  %v1406_v52 = vld [vmem:[#allocation21 + $0x48] sm:$0xff]  ;;  %3712 = vmatpush3.bf16.msra.mxu1 %v3709_v34 }
 0x3d2   :  { %v704_v56 = vadd.f32 %v2461_v35, %v703_v55  ;;  %3104 = vmatprep.mubr.f32.mxu1 %v756_v51  ;;  %v1405_v51 = vld [vmem:[#allocation21 + $0x40] sm:$0xff]  ;;  %3714 = vmatprep.subr.bf16.mxu1 %v3713_v48  ;;  %v1122_v55 = vld [vmem:[#allocation16 + $0x38] sm:$0xff] }
 0x3d3   :  { %3105 = vmatmul.mubr.f32.gmra.mrb[36].mxu1 %v757_v53  ;;  %v759_v59 = vmax.f32 %v709_v54, 0.0  ;;  %v3717_v53 = vpack.c.bf16 %v1120_v50, %v1119_v49  ;;  %v1121_v54 = vld [vmem:[#allocation16 + $0x30] sm:$0xff] }
 0x3d4   :  { %v758_v57 = vmax.f32 %v704_v56, 0.0  ;;  %v3056_v58 = vpop.f32.mrb[8].mxu0  ;;  %1435 = vperm.xlu1 %3982, %v1404_v43   ;;  %v1407_v56 = vld [vmem:[#allocation21 + $0x50] sm:$0xff] }
 0x3d5   :  { %v719_v60 = vadd.f32 %v3056_v58, %v2461_v35  ;;  %v713_v61 = vpop.f32.mrb[9].mxu0  ;;  %3716 = vmatpush3.bf16.msra.mxu1 %v3713_v48  ;;  %v3721_v58 = vpack.c.bf16 %v1122_v55, %v1121_v54 }
 0x3d6   :  { %v714_v62 = vadd.f32 %v2461_v35, %v713_v61  ;;  %3107 = vmatprep.mubr.f32.mxu1 %v758_v57  ;;  %v1408_v57 = vld [vmem:[#allocation21 + $0x58] sm:$0xff]  ;;  %3718 = vmatprep.subr.bf16.mxu1 %v3717_v53  ;;  %v1409_v61 = vld [vmem:[#allocation21 + $0x60] sm:$0xff] }
 0x3d7   :  { %3108 = vmatmul.mubr.f32.gmra.mrb[38].mxu1 %v759_v59  ;;  %v761_v1 = vmax.f32 %v719_v60, 0.0  ;;  %v1123_v59 = vld [vmem:[#allocation16 + $0x40] sm:$0xff]  ;;  %v1124_v60 = vld [vmem:[#allocation16 + $0x48] sm:$0xff] }
 0x3d8   :  { %v760_v63 = vmax.f32 %v714_v62, 0.0  ;;  %v3059_v0 = vpop.f32.mrb[10].mxu0  ;;  %1441 = vperm.xlu1 %3982, %v1406_v52   ;;  %v1410_v62 = vld [vmem:[#allocation21 + $0x68] sm:$0xff] }
 0x3d9   :  { %v729_v2 = vadd.f32 %v3059_v0, %v2461_v35  ;;  %v723_v3 = vpop.f32.mrb[11].mxu0  ;;  %3720 = vmatpush3.bf16.msra.mxu1 %v3717_v53  ;;  %v1125_v0 = vld [vmem:[#allocation16 + $0x50] sm:$0xff] }
 0x3da   :  { %v724_v4 = vadd.f32 %v2461_v35, %v723_v3  ;;  %3110 = vmatprep.mubr.f32.mxu1 %v760_v63  ;;  %3722 = vmatprep.subr.bf16.mxu1 %v3721_v58  ;;  %v3725_v63 = vpack.c.bf16 %v1124_v60, %v1123_v59  ;;  %v1412_v3 = vld [vmem:[#allocation21 + $0x78] sm:$0xff] }
 0x3db   :  { %3111 = vmatmul.mubr.f32.gmra.mrb[40].mxu1 %v761_v1  ;;  %v763_v7 = vmax.f32 %v729_v2, 0.0  ;;  %v1126_v1 = vld [vmem:[#allocation16 + $0x58] sm:$0xff] }
 0x3dc   :  { %v762_v5 = vmax.f32 %v724_v4, 0.0  ;;  %v3062_v6 = vpop.f32.mrb[12].mxu0  ;;  %1447 = vperm.xlu1 %3982, %v1408_v57   ;;  %v1411_v2 = vld [vmem:[#allocation21 + $0x70] sm:$0xff]  ;;  %v3729_v4 = vpack.c.bf16 %v1126_v1, %v1125_v0 }
 0x3dd   :  { %v739_v8 = vadd.f32 %v3062_v6, %v2461_v35  ;;  %v733_v9 = vpop.f32.mrb[13].mxu0  ;;  %3724 = vmatpush3.bf16.msra.mxu1 %v3721_v58  ;;  %v1128_v6 = vld [vmem:[#allocation16 + $0x68] sm:$0xff]  ;;  %v1105_v0 = vld [vmem:[#allocation15 + $0x30] sm:$0xff]  ;;  %v1106_v1 = vld [vmem:[#allocation15 + $0x38] sm:$0xff] }
 0x3de   :  { %v734_v10 = vadd.f32 %v2461_v35, %v733_v9  ;;  %3113 = vmatprep.mubr.f32.mxu1 %v762_v5  ;;  %3726 = vmatprep.subr.bf16.mxu1 %v3725_v63  ;;  %v1127_v5 = vld [vmem:[#allocation16 + $0x60] sm:$0xff] }
 0x3df   :  { %3114 = vmatmul.mubr.f32.gmra.mrb[42].mxu1 %v763_v7  ;;  %v765_v13 = vmax.f32 %v739_v8, 0.0  ;;  %v1285_v7 = vld [vmem:[#allocation19] sm:$0xff]  ;;  %v1286_v8 = vld [vmem:[#allocation19 + $0x8] sm:$0xff]  ;;  %v3733_v9 = vpack.c.bf16 %v1128_v6, %v1127_v5 }
 0x3e0   :  { %v764_v11 = vmax.f32 %v734_v10, 0.0  ;;  %v3065_v12 = vpop.f32.mrb[14].mxu0  ;;  %1453 = vperm.xlu1 %3982, %v1410_v62   ;;  %v1287_v10 = vld [vmem:[#allocation19 + $0x10] sm:$0xff] }
 0x3e1   :  { %v749_v14 = vadd.f32 %v3065_v12, %v2461_v35  ;;  %v743_v15 = vpop.f32.mrb[15].mxu0  ;;  %3728 = vmatpush3.bf16.msra.mxu1 %v3725_v63  ;;  %v1289_v12 = vld [vmem:[#allocation19 + $0x20] sm:$0xff]  ;;  %v1109_v5 = vld [vmem:[#allocation15 + $0x50] sm:$0xff] }
 0x3e2   :  { %v744_v31 = vadd.f32 %v2461_v35, %v743_v15  ;;  %3116 = vmatprep.mubr.f32.mxu1 %v764_v11  ;;  %v1403_v35 = vld [vmem:[#allocation21 + $0x30] sm:$0xff]  ;;  %3730 = vmatprep.subr.bf16.mxu1 %v3729_v4  ;;  %v1288_v11 = vld [vmem:[#allocation19 + $0x18] sm:$0xff] }
 0x3e3   :  { %3117 = vmatmul.mubr.f32.gmra.mrb[44].mxu1 %v765_v13  ;;  %v767_v33 = vmax.f32 %v749_v14, 0.0  ;;  %1432 = vperm.xlu0 %3981, %v1403_v35   ;;  %v1290_v13 = vld [vmem:[#allocation19 + $0x28] sm:$0xff]  ;;  %v1291_v14 = vld [vmem:[#allocation19 + $0x30] sm:$0xff]  ;;  %v1292_v15 = vld [vmem:[#allocation19 + $0x38] sm:$0xff] }
 0x3e4   :  { %v766_v32 = vmax.f32 %v744_v31, 0.0  ;;  %1459 = vperm.xlu1 %3982, %v1412_v3   ;;  %v1293_v31 = vld [vmem:[#allocation19 + $0x40] sm:$0xff] }
 0x3e5   :  { %3732 = vmatpush3.bf16.msra.mxu1 %v3729_v4  ;;  %v1107_v3 = vld [vmem:[#allocation15 + $0x40] sm:$0xff]  ;;  %v1108_v4 = vld [vmem:[#allocation15 + $0x48] sm:$0xff] }
 0x3e6   :  { %3119 = vmatprep.mubr.f32.mxu1 %v766_v32  ;;  %3734 = vmatprep.subr.bf16.mxu1 %v3733_v9  ;;  %v1294_v32 = vld [vmem:[#allocation19 + $0x48] sm:$0xff] }
 0x3e7   :  { %3120 = vmatmul.mubr.f32.gmra.mrb[46].mxu1 %v767_v33  ;;  %1438 = vperm.xlu0 %3981, %v1405_v51   ;;  %v1295_v33 = vld [vmem:[#allocation19 + $0x50] sm:$0xff] }
 0x3e8   :  { %1305 = vperm.xlu1 %3982, %v1286_v8   ;;  %v1283_v8 = vlaneseq }
 0x3e9   :  { %3736 = vmatpush3.bf16.msra.mxu1 %v3733_v9 }
 0x3ea   :  { %v4720_v9 = vand.u32 127, %v1283_v8 }
 0x3eb   :  { %1444 = vperm.xlu0 %3981, %v1407_v56  }
 0x3ec   :  { %1311 = vperm.xlu1 %3982, %v1288_v11   ;;  %v1112_v11 = vld [vmem:[#allocation15 + $0x68] sm:$0xff] }
 0x3ef   :  { %1450 = vperm.xlu0 %3981, %v1409_v61  }
 0x3f0   :  { %1317 = vperm.xlu1 %3982, %v1290_v13   ;;  %v1113_v13 = vld [vmem:[#allocation15 + $0x70] sm:$0xff] }
 0x3f3   :  { %1456 = vperm.xlu0 %3981, %v1411_v2  }
 0x3f4   :  { %1323 = vperm.xlu1 %3982, %v1292_v15   ;;  %v4350_v15 = vmov 1.0  }
 0x3f7   :  { %1302 = vperm.xlu0 %3981, %v1285_v7   ;;  %v1110_v7 = vld [vmem:[#allocation15 + $0x58] sm:$0xff] }
 0x3f8   :  { %1329 = vperm.xlu1 %3982, %v1294_v32  }
 0x3fb   :  { %1308 = vperm.xlu0 %3981, %v1287_v10   ;;  %v1111_v10 = vld [vmem:[#allocation15 + $0x60] sm:$0xff] }
 0x3fc   :  { %1335 = vperm.xlu1 %3982, %v1296_v36  }
 0x3ff   :  { %1314 = vperm.xlu0 %3981, %v1289_v12  }
 0x400   :  { %1341 = vperm.xlu1 %3982, %v1298_v38   ;;  %v4736_v38 = vld [vmem:[#allocation13 + $0x1] ss:$0 sm:$0xff] }
 0x403   :  { %1320 = vperm.xlu0 %3981, %v1291_v14   ;;  %v1114_v14 = vld [vmem:[#allocation15 + $0x78] sm:$0xff] }
 0x404   :  { %1347 = vperm.xlu1 %3982, %v1300_v40  }
 0x407   :  { %1326 = vperm.xlu0 %3981, %v1293_v31  }
 0x40b   :  { %1332 = vperm.xlu0 %3981, %v1295_v33  }
 0x40f   :  { %1338 = vperm.xlu0 %3981, %v1297_v37  }
 0x413   :  { %1344 = vperm.xlu0 %3981, %v1299_v39  }
 0x417   :  { %2429 = vperm.xlu0 %3981, %v2426_v41  }
 0x447   :  { %v4726_v31 = vpop.permute.xlu1 %1420 }
 0x448   :  { %vm1463_vm3 = vcmp.eq.s32.totalorder %v4720_v9, %v4726_v31  ;;  %v1838_v31 = vld [vmem:[#allocation22 + $0xb0] sm:$0xff] }
 0x44b   :  { %v4728_v32 = vpop.permute.xlu1 %1423 }
 0x44c   :  { %vm1464_vm6 = vcmp.eq.s32.totalorder %v4720_v9, %v4728_v32 }
 0x44f   :  { %v4730_v33 = vpop.permute.xlu1 %1429 }
 0x450   :  { %vm1466_vm10 = vcmp.eq.s32.totalorder %v4720_v9, %v4730_v33 }
 0x453   :  { %v4732_v36 = vpop.permute.xlu1 %1435 }
 0x454   :  { %vm1468_vm14 = vcmp.eq.s32.totalorder %v4720_v9, %v4732_v36  ;;  %v1844_v36 = vld [vmem:[#allocation22 + $0xe0] sm:$0xff] }
 0x457   :  { %v4734_v37 = vpop.permute.xlu1 %1441 }
 0x49e   :  { %v3100_v42 = vpop.f32.mrb[32].mxu1 }
 0x49f   :  { %v851_v35 = vpop.f32.mrb[33].mxu1 }
 0x4a0   :  { %v3677_v43 = vpack.c.bf16 %v3100_v42, %v851_v35  ;;  %v4739_v42 = vpop.permute.xlu1 %1447 }
 0x4a2   :  { %v3103_v44 = vpop.f32.mrb[34].mxu1  ;;  %3678 = vmatprep.subr.bf16.mxu0 %v3677_v43 }
 0x4a3   :  { %v861_v45 = vpop.f32.mrb[35].mxu1  ;;  %3680 = vmatpush3.bf16.msra.mxu0 %v3677_v43 }
 0x4a4   :  { %v3681_v46 = vpack.c.bf16 %v3103_v44, %v861_v45 }
 0x4a6   :  { %v3106_v34 = vpop.f32.mrb[36].mxu1  ;;  %3682 = vmatprep.subr.bf16.mxu0 %v3681_v46 }
 0x4a7   :  { %v871_v47 = vpop.f32.mrb[37].mxu1  ;;  %3684 = vmatpush3.bf16.msra.mxu0 %v3681_v46 }
 0x4a8   :  { %v3685_v48 = vpack.c.bf16 %v3106_v34, %v871_v47  ;;  %v4744_v47 = vpop.permute.xlu1 %1453 }
 0x4aa   :  { %v3109_v49 = vpop.f32.mrb[38].mxu1  ;;  %3686 = vmatprep.subr.bf16.mxu0 %v3685_v48 }
 0x4ab   :  { %v881_v50 = vpop.f32.mrb[39].mxu1  ;;  %3688 = vmatpush3.bf16.msra.mxu0 %v3685_v48 }
 0x4ac   :  { %v3689_v51 = vpack.c.bf16 %v3109_v49, %v881_v50 }
 0x4ae   :  { %v3112_v52 = vpop.f32.mrb[40].mxu1  ;;  %3690 = vmatprep.subr.bf16.mxu0 %v3689_v51 }
 0x4af   :  { %v891_v53 = vpop.f32.mrb[41].mxu1  ;;  %3692 = vmatpush3.bf16.msra.mxu0 %v3689_v51 }
 0x4b0   :  { %v3693_v54 = vpack.c.bf16 %v3112_v52, %v891_v53 }
 0x4b2   :  { %v3115_v55 = vpop.f32.mrb[42].mxu1  ;;  %3694 = vmatprep.subr.bf16.mxu0 %v3693_v54 }
 0x4b3   :  { %v901_v56 = vpop.f32.mrb[43].mxu1  ;;  %3696 = vmatpush3.bf16.msra.mxu0 %v3693_v54 }
 0x4b4   :  { %v3697_v57 = vpack.c.bf16 %v3115_v55, %v901_v56 }
 0x4b6   :  { %v3118_v58 = vpop.f32.mrb[44].mxu1  ;;  %3698 = vmatprep.subr.bf16.mxu0 %v3697_v57 }
 0x4b7   :  { %v911_v59 = vpop.f32.mrb[45].mxu1  ;;  %3700 = vmatpush3.bf16.msra.mxu0 %v3697_v57  ;;  %v4749_v57 = vpop.permute.xlu1 %1459 }
 0x4b8   :  { %v3701_v60 = vpack.c.bf16 %v3118_v58, %v911_v59 }
 0x4ba   :  { %v3121_v61 = vpop.f32.mrb[46].mxu1  ;;  %3702 = vmatprep.subr.bf16.mxu0 %v3701_v60 }
 0x4bb   :  { %v921_v62 = vpop.f32.mrb[47].mxu1  ;;  %3704 = vmatpush3.bf16.msra.mxu0 %v3701_v60 }
 0x4bc   :  { %v3705_v63 = vpack.c.bf16 %v3121_v61, %v921_v62 }
 0x4be   :  { %3706 = vmatprep.subr.bf16.mxu0 %v3705_v63 }
 0x4bf   :  { %3708 = vmatpush3.bf16.msra.mxu0 %v3705_v63 }
 0x4c2   :  { %3155 = vmatmul.mubr.f32.vlgmr.msra.gmra.mrb[16].mxu0 %v4644_v16  ;;  %v1415_v16 = vpop.permute.xlu0 %1414 }
 0x4c3   :  { %3157 = vmatprep.mubr.f32.mxu0 %v4646_v17  ;;  %vm1461_vm0 = vcmp.eq.s32.totalorder %v4720_v9, %v1415_v16  ;;  %v1306_v16 = vpop.permute.xlu1 %1305 }
 0x4c4   :  { %vm1350_vm2 = vcmp.eq.s32.totalorder %v4720_v9, %v1306_v16 }
 0x4c6   :  { %3158 = vmatmul.mubr.f32.gmra.mrb[18].mxu0 %v4650_v18  ;;  %v4705_v17 = vpop.permute.xlu0 %1417 }
 0x4c7   :  { %3160 = vmatprep.mubr.f32.mxu0 %v4652_v19  ;;  %v1129_v19 = vld [vmem:[#allocation16 + $0x70] sm:$0xff]  ;;  %vm1462_vm4 = vcmp.eq.s32.totalorder %v4720_v9, %v4705_v17 }
 0x4ca   :  { %3161 = vmatmul.mubr.f32.gmra.mrb[20].mxu0 %v4656_v20  ;;  %v4707_v18 = vpop.permute.xlu0 %1426  ;;  %v1130_v20 = vld [vmem:[#allocation16 + $0x78] sm:$0xff] }
 0x4cb   :  { %3163 = vmatprep.mubr.f32.mxu0 %v4658_v21  ;;  %v3737_v21 = vpack.c.bf16 %v1130_v20, %v1129_v19  ;;  %vm1465_vm8 = vcmp.eq.s32.totalorder %v4720_v9, %v4707_v18 }
 0x4cd   :  { %3738 = vmatprep.subr.bf16.mxu1 %v3737_v21 }
 0x4ce   :  { %3164 = vmatmul.mubr.f32.gmra.mrb[22].mxu0 %v4662_v22  ;;  %v4709_v22 = vpop.permute.xlu0 %1432  ;;  %3740 = vmatpush3.bf16.msra.mxu1 %v3737_v21 }
 0x4cf   :  { %3166 = vmatprep.mubr.f32.mxu0 %v4664_v23  ;;  %v1099_v23 = vld [vmem:[#allocation15] sm:$0xff]  ;;  %vm1467_vm12 = vcmp.eq.s32.totalorder %v4720_v9, %v4709_v22 }
 0x4d0   :  { %3210 = vmatprep.mubr.f32.mxu1 %v1099_v23 }
 0x4d2   :  { %3167 = vmatmul.mubr.f32.gmra.mrb[24].mxu0 %v4668_v24  ;;  %v1100_v24 = vld [vmem:[#allocation15 + $0x8] sm:$0xff] }
 0x4d3   :  { %3169 = vmatprep.mubr.f32.mxu0 %v4670_v25  ;;  %3211 = vmatmul.mubr.f32.vlgmr.msra.gmra.mrb[48].mxu1 %v1100_v24  ;;  %v4711_v25 = vpop.permute.xlu0 %1438 }
 0x4d6   :  { %3170 = vmatmul.mubr.f32.gmra.mrb[26].mxu0 %v4674_v26  ;;  %v1101_v26 = vld [vmem:[#allocation15 + $0x10] sm:$0xff] }
 0x4d7   :  { %3172 = vmatprep.mubr.f32.mxu0 %v4676_v27  ;;  %3213 = vmatprep.mubr.f32.mxu1 %v1101_v26  ;;  %v1102_v27 = vld [vmem:[#allocation15 + $0x18] sm:$0xff] }
 0x4d8   :  { %3214 = vmatmul.mubr.f32.gmra.mrb[50].mxu1 %v1102_v27 }
 0x4da   :  { %3173 = vmatmul.mubr.f32.gmra.mrb[28].mxu0 %v4680_v28  ;;  %v1103_v28 = vld [vmem:[#allocation15 + $0x20] sm:$0xff] }
 0x4db   :  { %3175 = vmatprep.mubr.f32.mxu0 %v4682_v29  ;;  %v4713_v29 = vpop.permute.xlu0 %1444  ;;  %3216 = vmatprep.mubr.f32.mxu1 %v1103_v28 }
 0x4de   :  { %3176 = vmatmul.mubr.f32.gmra.mrb[30].mxu0 %v4686_v30  ;;  %v1104_v30 = vld [vmem:[#allocation15 + $0x28] sm:$0xff] }
 0x4df   :  { %3217 = vmatmul.mubr.f32.gmra.mrb[52].mxu1 %v1104_v30  ;;  %v4715_v2 = vpop.permute.xlu0 %1450 }
 0x4e0   :  { %3219 = vmatprep.mubr.f32.mxu1 %v1105_v0 }
 0x4e3   :  { %3220 = vmatmul.mubr.f32.gmra.mrb[54].mxu1 %v1106_v1  ;;  %v4717_v6 = vpop.permute.xlu0 %1456  ;;  %v1312_v1 = vpop.permute.xlu1 %1311 }
 0x4e4   :  { %3222 = vmatprep.mubr.f32.mxu1 %v1107_v3  ;;  %vm1352_vm7 = vcmp.eq.s32.totalorder %v4720_v9, %v1312_v1  ;;  %v1817_v1 = vld [vmem:[#allocation22 + $0x10] sm:$0xff] }
 0x4e7   :  { %3223 = vmatmul.mubr.f32.gmra.mrb[56].mxu1 %v1108_v4  ;;  %v1303_v12 = vpop.permute.xlu0 %1302 }
 0x4e8   :  { %3225 = vmatprep.mubr.f32.mxu1 %v1109_v5  ;;  %vm1349_vm1 = vcmp.eq.s32.totalorder %v4720_v9, %v1303_v12  ;;  %v1833_v12 = vld [vmem:[#allocation22 + $0x88] sm:$0xff] }
 0x4e9   :  { %3266 = vmatprep.mubr.msk.f32.mxu0 %vm1349_vm1, %v4350_v15 }
 0x4eb   :  { %3226 = vmatmul.mubr.f32.gmra.mrb[58].mxu1 %v1110_v7  ;;  %v1309_v28 = vpop.permute.xlu0 %1308 }
 0x4ec   :  { %3228 = vmatprep.mubr.f32.mxu1 %v1111_v10  ;;  %vm1351_vm5 = vcmp.eq.s32.totalorder %v4720_v9, %v1309_v28  ;;  %v1815_v28 = vld [vmem:[#allocation22] sm:$0xff] }
 0x4ef   :  { %3229 = vmatmul.mubr.f32.gmra.mrb[60].mxu1 %v1112_v11  ;;  %v1832_v11 = vld [vmem:[#allocation22 + $0x80] sm:$0xff] }
 0x4f0   :  { %3231 = vmatprep.mubr.f32.mxu1 %v1113_v13 }
 0x4f3   :  { %3232 = vmatmul.mubr.f32.gmra.mrb[62].mxu1 %v1114_v14  ;;  %v1315_v14 = vpop.permute.xlu0 %1314 }
 0x4f4   :  { %3322 = vmatprep.mubr.msk.f32.mxu1 %vm1461_vm0, %v4350_v15  ;;  %vm1353_vm9 = vcmp.eq.s32.totalorder %v4720_v9, %v1315_v14  ;;  %vm1469_vm0 = vcmp.eq.s32.totalorder %v4720_v9, %v4711_v25 }
 0x595   :  { %v3156_v39 = vpop.f32.mrb[16].mxu0 }
 0x596   :  { %v1010_v40 = vadd.f32 %v3156_v39, %v4736_v38  ;;  %v1004_v41 = vpop.f32.mrb[17].mxu0  ;;  %v1318_v39 = vpop.permute.xlu1 %1317 }
 0x597   :  { %v1005_v35 = vadd.f32 %v4736_v38, %v1004_v41  ;;  %v3805_v41 = vpack.c.bf16 %v1833_v12, %v1832_v11  ;;  %vm1354_vm11 = vcmp.eq.s32.totalorder %v4720_v9, %v1318_v39  ;;  %v1819_v12 = vld [vmem:[#allocation22 + $0x20] sm:$0xff] }
 0x599   :  { %v3741_v43 = vpack.c.bf16 %v1010_v40, %v1005_v35  ;;  %v3159_v44 = vpop.f32.mrb[18].mxu0  ;;  %v1834_v35 = vld [vmem:[#allocation22 + $0x90] sm:$0xff] }
 0x59a   :  { %v1020_v45 = vadd.f32 %v3159_v44, %v4736_v38  ;;  %v1014_v46 = vpop.f32.mrb[19].mxu0 }
 0x59b   :  { %v1015_v34 = vadd.f32 %v4736_v38, %v1014_v46  ;;  %3742 = vmatprep.subr.bf16.mxu0 %v3741_v43  ;;  %3774 = vmatprep.subr.bf16.mxu1 %v3741_v43  ;;  %v1836_v46 = vld [vmem:[#allocation22 + $0xa0] sm:$0xff] }
 0x59c   :  { %3744 = vmatpush3.bf16.msra.mxu0 %v3741_v43  ;;  %3776 = vmatpush3.bf16.msra.mxu1 %v3741_v43  ;;  %v1835_v43 = vld [vmem:[#allocation22 + $0x98] sm:$0xff] }
 0x59d   :  { %v3745_v48 = vpack.c.bf16 %v1020_v45, %v1015_v34  ;;  %v3162_v49 = vpop.f32.mrb[20].mxu0  ;;  %v3809_v44 = vpack.c.bf16 %v1835_v43, %v1834_v35  ;;  %v1324_v45 = vpop.permute.xlu1 %1323  ;;  %v1837_v34 = vld [vmem:[#allocation22 + $0xa8] sm:$0xff]  ;;  %v1821_v43 = vld [vmem:[#allocation22 + $0x30] sm:$0xff] }
 0x59e   :  { %v1030_v50 = vadd.f32 %v3162_v49, %v4736_v38  ;;  %v1024_v51 = vpop.f32.mrb[21].mxu0  ;;  %v3813_v17 = vpack.c.bf16 %v1837_v34, %v1836_v46  ;;  %vm1356_vm15 = vcmp.eq.s32.totalorder %v4720_v9, %v1324_v45 }
 0x59f   :  { %v1025_v52 = vadd.f32 %v4736_v38, %v1024_v51  ;;  %3746 = vmatprep.subr.bf16.mxu0 %v3745_v48  ;;  %3778 = vmatprep.subr.bf16.mxu1 %v3745_v48  ;;  %v1841_v51 = vld [vmem:[#allocation22 + $0xc8] sm:$0xff] }
 0x5a0   :  { %3748 = vmatpush3.bf16.msra.mxu0 %v3745_v48  ;;  %3780 = vmatpush3.bf16.msra.mxu1 %v3745_v48  ;;  %v1839_v48 = vld [vmem:[#allocation22 + $0xb8] sm:$0xff] }
 0x5a1   :  { %v3749_v53 = vpack.c.bf16 %v1030_v50, %v1025_v52  ;;  %v3165_v54 = vpop.f32.mrb[22].mxu0  ;;  %v1330_v32 = vpop.permute.xlu1 %1329  ;;  %v3817_v18 = vpack.c.bf16 %v1839_v48, %v1838_v31  ;;  %v1840_v50 = vld [vmem:[#allocation22 + $0xc0] sm:$0xff]  ;;  %v1824_v48 = vld [vmem:[#allocation22 + $0x48] sm:$0xff] }
 0x5a2   :  { %v1040_v55 = vadd.f32 %v3165_v54, %v4736_v38  ;;  %v1034_v56 = vpop.f32.mrb[23].mxu0  ;;  %v3821_v22 = vpack.c.bf16 %v1841_v51, %v1840_v50  ;;  %v1843_v54 = vld [vmem:[#allocation22 + $0xd8] sm:$0xff]  ;;  %v1823_v31 = vld [vmem:[#allocation22 + $0x40] sm:$0xff] }
 0x5a3   :  { %v1035_v58 = vadd.f32 %v4736_v38, %v1034_v56  ;;  %3750 = vmatprep.subr.bf16.mxu0 %v3749_v53  ;;  %3782 = vmatprep.subr.bf16.mxu1 %v3749_v53  ;;  %v3853_v51 = vpack.c.bf16 %v1824_v48, %v1823_v31  ;;  %v2145_v31 = vld [vmem:[#allocation22 + $0x130] sm:$0xff]  ;;  %v2146_v48 = vld [vmem:[#allocation22 + $0x138] sm:$0xff] }
 0x5a4   :  { %3752 = vmatpush3.bf16.msra.mxu0 %v3749_v53  ;;  %3784 = vmatpush3.bf16.msra.mxu1 %v3749_v53  ;;  %v1842_v53 = vld [vmem:[#allocation22 + $0xd0] sm:$0xff] }
 0x5a5   :  { %v3753_v59 = vpack.c.bf16 %v1040_v55, %v1035_v58  ;;  %v3168_v60 = vpop.f32.mrb[24].mxu0  ;;  %v1336_v52 = vpop.permute.xlu1 %1335  ;;  %v3825_v25 = vpack.c.bf16 %v1843_v54, %v1842_v53  ;;  %v1845_v55 = vld [vmem:[#allocation22 + $0xe8] sm:$0xff]  ;;  %v1846_v58 = vld [vmem:[#allocation22 + $0xf0] sm:$0xff] }
 0x5a6   :  { %v1050_v61 = vadd.f32 %v3168_v60, %v4736_v38  ;;  %v1044_v62 = vpop.f32.mrb[25].mxu0 }
 0x5a7   :  { %v1045_v63 = vadd.f32 %v4736_v38, %v1044_v62  ;;  %3754 = vmatprep.subr.bf16.mxu0 %v3753_v59  ;;  %3786 = vmatprep.subr.bf16.mxu1 %v3753_v59 }
 0x5a8   :  { %3756 = vmatpush3.bf16.msra.mxu0 %v3753_v59  ;;  %3788 = vmatpush3.bf16.msra.mxu1 %v3753_v59  ;;  %v1847_v59 = vld [vmem:[#allocation22 + $0xf8] sm:$0xff] }
 0x5a9   :  { %v3757_v19 = vpack.c.bf16 %v1050_v61, %v1045_v63  ;;  %v3171_v20 = vpop.f32.mrb[26].mxu0 }
 0x5aa   :  { %v1060_v21 = vadd.f32 %v3171_v20, %v4736_v38  ;;  %v1054_v23 = vpop.f32.mrb[27].mxu0 }
 0x5ab   :  { %v1055_v24 = vadd.f32 %v4736_v38, %v1054_v23  ;;  %3758 = vmatprep.subr.bf16.mxu0 %v3757_v19  ;;  %3790 = vmatprep.subr.bf16.mxu1 %v3757_v19 }
 0x5ac   :  { %3760 = vmatpush3.bf16.msra.mxu0 %v3757_v19  ;;  %3792 = vmatpush3.bf16.msra.mxu1 %v3757_v19 }
 0x5ad   :  { %v3761_v26 = vpack.c.bf16 %v1060_v21, %v1055_v24  ;;  %v3174_v27 = vpop.f32.mrb[28].mxu0 }
 0x5ae   :  { %v1070_v30 = vadd.f32 %v3174_v27, %v4736_v38  ;;  %v1064_v0 = vpop.f32.mrb[29].mxu0 }
 0x5af   :  { %v1065_v3 = vadd.f32 %v4736_v38, %v1064_v0  ;;  %3762 = vmatprep.subr.bf16.mxu0 %v3761_v26  ;;  %3794 = vmatprep.subr.bf16.mxu1 %v3761_v26 }
 0x5b0   :  { %3764 = vmatpush3.bf16.msra.mxu0 %v3761_v26  ;;  %3796 = vmatpush3.bf16.msra.mxu1 %v3761_v26 }
 0x5b1   :  { %v3765_v4 = vpack.c.bf16 %v1070_v30, %v1065_v3  ;;  %v3177_v5 = vpop.f32.mrb[30].mxu0  ;;  %v1816_v30 = vld [vmem:[#allocation22 + $0x8] sm:$0xff]  ;;  %v1818_v3 = vld [vmem:[#allocation22 + $0x18] sm:$0xff] }
 0x5b2   :  { %v1080_v7 = vadd.f32 %v3177_v5, %v4736_v38  ;;  %v1074_v10 = vpop.f32.mrb[31].mxu0  ;;  %v3837_v0 = vpack.c.bf16 %v1816_v30, %v1815_v28  ;;  %v3841_v11 = vpack.c.bf16 %v1818_v3, %v1817_v1 }
 0x5b3   :  { %v1075_v13 = vadd.f32 %v4736_v38, %v1074_v10  ;;  %3766 = vmatprep.subr.bf16.mxu0 %v3765_v4  ;;  %3798 = vmatprep.subr.bf16.mxu1 %v3765_v4  ;;  %v1321_v38 = vpop.permute.xlu0 %1320 }
 0x5b4   :  { %3768 = vmatpush3.bf16.msra.mxu0 %v3765_v4  ;;  %3800 = vmatpush3.bf16.msra.mxu1 %v3765_v4  ;;  %vm1355_vm13 = vcmp.eq.s32.totalorder %v4720_v9, %v1321_v38  ;;  %v1822_v38 = vld [vmem:[#allocation22 + $0x38] sm:$0xff] }
 0x5b5   :  { %v3769_v40 = vpack.c.bf16 %v1080_v7, %v1075_v13  ;;  %v1820_v13 = vld [vmem:[#allocation22 + $0x28] sm:$0xff] }
 0x5b6   :  { %v3845_v35 = vpack.c.bf16 %v1820_v13, %v1819_v12 }
 0x5b7   :  { %3770 = vmatprep.subr.bf16.mxu0 %v3769_v40  ;;  %3802 = vmatprep.subr.bf16.mxu1 %v3769_v40  ;;  %v1327_v49 = vpop.permute.xlu0 %1326 }
 0x5b8   :  { %3772 = vmatpush3.bf16.msra.mxu0 %v3769_v40  ;;  %3804 = vmatpush3.bf16.msra.mxu1 %v3769_v40  ;;  %vm1357_vm1 = vcmp.eq.s32.totalorder %v4720_v9, %v1327_v49 }
 0x5b9   :  { %3806 = vmatprep.subr.bf16.mxu0 %v3805_v41 }
 0x5bb   :  { %3267 = vmatmul.mubr.msk.f32.vlgmr.msra.gmra.mrb[32].mxu0 %vm1350_vm2, %v4350_v15  ;;  %3323 = vmatmul.mubr.msk.f32.vlgmr.msra.gmra.mrb[64].mxu1 %vm1462_vm4, %v4350_v15  ;;  %v1333_v33 = vpop.permute.xlu0 %1332  ;;  %vm1470_vm2 = vcmp.eq.s32.totalorder %v4720_v9, %v4734_v37  ;;  %vm1471_vm4 = vcmp.eq.s32.totalorder %v4720_v9, %v4713_v29  ;;  %v1342_v37 = vpop.permute.xlu1 %1341  ;;  %v3829_v29 = vpack.c.bf16 %v1845_v55, %v1844_v36  ;;  %v1827_v55 = vld [vmem:[#allocation22 + $0x60] sm:$0xff] }
 0x5bc   :  { %3269 = vmatprep.mubr.msk.f32.mxu0 %vm1351_vm5, %v4350_v15  ;;  %3325 = vmatprep.mubr.msk.f32.mxu1 %vm1463_vm3, %v4350_v15  ;;  %vm1358_vm3 = vcmp.eq.s32.totalorder %v4720_v9, %v1330_v32  ;;  %vm1359_vm5 = vcmp.eq.s32.totalorder %v4720_v9, %v1333_v33  ;;  %v1825_v33 = vld [vmem:[#allocation22 + $0x50] sm:$0xff] }
 0x5bd   :  { %3808 = vmatpush3.bf16.msra.mxu0 %v3805_v41 }
 0x5be   :  { %3810 = vmatprep.subr.bf16.mxu0 %v3809_v44 }
 0x5bf   :  { %3270 = vmatmul.mubr.msk.f32.gmra.mrb[34].mxu0 %vm1352_vm7, %v4350_v15  ;;  %3326 = vmatmul.mubr.msk.f32.gmra.mrb[66].mxu1 %vm1464_vm6, %v4350_v15  ;;  %v1339_v56 = vpop.permute.xlu0 %1338  ;;  %vm1472_vm6 = vcmp.eq.s32.totalorder %v4720_v9, %v4739_v42  ;;  %vm1360_vm7 = vcmp.eq.s32.totalorder %v4720_v9, %v1336_v52  ;;  %v1348_v60 = vpop.permute.xlu1 %1347 }
 0x5c0   :  { %3272 = vmatprep.mubr.msk.f32.mxu0 %vm1353_vm9, %v4350_v15  ;;  %3328 = vmatprep.mubr.msk.f32.mxu1 %vm1465_vm8, %v4350_v15  ;;  %vm1473_vm8 = vcmp.eq.s32.totalorder %v4720_v9, %v4715_v2  ;;  %vm1361_vm9 = vcmp.eq.s32.totalorder %v4720_v9, %v1339_v56  ;;  %v3833_v2 = vpack.c.bf16 %v1847_v59, %v1846_v58  ;;  %v1828_v56 = vld [vmem:[#allocation22 + $0x68] sm:$0xff] }
 0x5c1   :  { %3812 = vmatpush3.bf16.msra.mxu0 %v3809_v44 }
 0x5c2   :  { %3814 = vmatprep.subr.bf16.mxu0 %v3813_v17 }
 0x5c3   :  { %3273 = vmatmul.mubr.msk.f32.gmra.mrb[36].mxu0 %vm1354_vm11, %v4350_v15  ;;  %3329 = vmatmul.mubr.msk.f32.gmra.mrb[68].mxu1 %vm1466_vm10, %v4350_v15  ;;  %vm1474_vm10 = vcmp.eq.s32.totalorder %v4720_v9, %v4744_v47  ;;  %v1345_v42 = vpop.permute.xlu0 %1344  ;;  %vm1362_vm11 = vcmp.eq.s32.totalorder %v4720_v9, %v1342_v37 }
 0x5c4   :  { %3275 = vmatprep.mubr.msk.f32.mxu0 %vm1355_vm13, %v4350_v15  ;;  %3331 = vmatprep.mubr.msk.f32.mxu1 %vm1467_vm12, %v4350_v15  ;;  %vm1475_vm12 = vcmp.eq.s32.totalorder %v4720_v9, %v4717_v6  ;;  %vm1363_vm13 = vcmp.eq.s32.totalorder %v4720_v9, %v1345_v42  ;;  %v4835_v6 = vpop.f32.mrb[48].mxu1  ;;  %v3861_v42 = vpack.c.bf16 %v1828_v56, %v1827_v55 }
 0x5c5   :  { %3816 = vmatpush3.bf16.msra.mxu0 %v3813_v17  ;;  %v4837_v47 = vpop.f32.mrb[49].mxu1  ;;  %v3849_v17 = vpack.c.bf16 %v1822_v38, %v1821_v43  ;;  %v2142_v43 = vld [vmem:[#allocation22 + $0x118] sm:$0xff] }
 0x5c6   :  { %3818 = vmatprep.subr.bf16.mxu0 %v3817_v18  ;;  %v4839_v61 = vpop.f32.mrb[50].mxu1 }
 0x5c7   :  { %3276 = vmatmul.mubr.msk.f32.gmra.mrb[38].mxu0 %vm1356_vm15, %v4350_v15  ;;  %3332 = vmatmul.mubr.msk.f32.gmra.mrb[70].mxu1 %vm1468_vm14, %v4350_v15  ;;  %vm1476_vm14 = vcmp.eq.s32.totalorder %v4720_v9, %v4749_v57  ;;  %vm1364_vm15 = vcmp.eq.s32.totalorder %v4720_v9, %v1348_v60  ;;  %v4841_v62 = vpop.f32.mrb[51].mxu1  ;;  %v1830_v60 = vld [vmem:[#allocation22 + $0x78] sm:$0xff] }
 0x5c8   :  { %3278 = vmatprep.mubr.msk.f32.mxu0 %vm1357_vm1, %v4350_v15  ;;  %3334 = vmatprep.mubr.msk.f32.mxu1 %vm1469_vm0, %v4350_v15  ;;  %v4843_v63 = vpop.f32.mrb[52].mxu1  ;;  %vm4352_vm0 = vmmov 0  }
 0x5c9   :  { %3820 = vmatpush3.bf16.msra.mxu0 %v3817_v18  ;;  %v4845_v16 = vpop.f32.mrb[53].mxu1 }
 0x5ca   :  { %3822 = vmatprep.subr.bf16.mxu0 %v3821_v22  ;;  %v4847_v57 = vpop.f32.mrb[54].mxu1 }
 0x5cb   :  { %3279 = vmatmul.mubr.msk.f32.gmra.mrb[40].mxu0 %vm1358_vm3, %v4350_v15  ;;  %3335 = vmatmul.mubr.msk.f32.gmra.mrb[72].mxu1 %vm1470_vm2, %v4350_v15  ;;  %v4849_v9 = vpop.f32.mrb[55].mxu1 }
 0x5cc   :  { %3281 = vmatprep.mubr.msk.f32.mxu0 %vm1359_vm5, %v4350_v15  ;;  %3337 = vmatprep.mubr.msk.f32.mxu1 %vm1471_vm4, %v4350_v15  ;;  %v4851_v19 = vpop.f32.mrb[56].mxu1 }
 0x5cd   :  { %3824 = vmatpush3.bf16.msra.mxu0 %v3821_v22  ;;  %v1826_v22 = vld [vmem:[#allocation22 + $0x58] sm:$0xff] }
 0x5ce   :  { %3826 = vmatprep.subr.bf16.mxu0 %v3825_v25  ;;  %v3857_v36 = vpack.c.bf16 %v1826_v22, %v1825_v33  ;;  %v2152_v33 = vld [vmem:[#allocation22 + $0x168] sm:$0xff]  ;;  %v2154_v22 = vld [vmem:[#allocation22 + $0x178] sm:$0xff] }
 0x5cf   :  { %3282 = vmatmul.mubr.msk.f32.gmra.mrb[42].mxu0 %vm1360_vm7, %v4350_v15  ;;  %3338 = vmatmul.mubr.msk.f32.gmra.mrb[74].mxu1 %vm1472_vm6, %v4350_v15 }
 0x5d0   :  { %3284 = vmatprep.mubr.msk.f32.mxu0 %vm1361_vm9, %v4350_v15  ;;  %3340 = vmatprep.mubr.msk.f32.mxu1 %vm1473_vm8, %v4350_v15 }
 0x5d1   :  { %3828 = vmatpush3.bf16.msra.mxu0 %v3825_v25 }
 0x5d2   :  { %3830 = vmatprep.subr.bf16.mxu0 %v3829_v29 }
 0x5d3   :  { %3285 = vmatmul.mubr.msk.f32.gmra.mrb[44].mxu0 %vm1362_vm11, %v4350_v15  ;;  %3341 = vmatmul.mubr.msk.f32.gmra.mrb[76].mxu1 %vm1474_vm10, %v4350_v15 }
 0x5d4   :  { %3287 = vmatprep.mubr.msk.f32.mxu0 %vm1363_vm13, %v4350_v15  ;;  %3343 = vmatprep.mubr.msk.f32.mxu1 %vm1475_vm12, %v4350_v15 }
 0x5d5   :  { %3832 = vmatpush3.bf16.msra.mxu0 %v3829_v29 }
 0x5d6   :  { %3834 = vmatprep.subr.bf16.mxu0 %v3833_v2 }
 0x5d7   :  { %3288 = vmatmul.mubr.msk.f32.gmra.mrb[46].mxu0 %vm1364_vm15, %v4350_v15  ;;  %3344 = vmatmul.mubr.msk.f32.gmra.mrb[78].mxu1 %vm1476_vm14, %v4350_v15  ;;  %v4853_v15 = vpop.f32.mrb[57].mxu1 }
 0x5d8   :  { %v4855_v20 = vpop.f32.mrb[58].mxu1 }
 0x5d9   :  { %3836 = vmatpush3.bf16.msra.mxu0 %v3833_v2  ;;  %v4857_v21 = vpop.f32.mrb[59].mxu1  ;;  %v1829_v2 = vld [vmem:[#allocation22 + $0x70] sm:$0xff] }
 0x5da   :  { %v4859_v23 = vpop.f32.mrb[60].mxu1  ;;  %3838 = vmatprep.subr.bf16.mxu0 %v3837_v0  ;;  %v3865_v3 = vpack.c.bf16 %v1830_v60, %v1829_v2 }
 0x5db   :  { %v4861_v24 = vpop.f32.mrb[61].mxu1 }
 0x5dc   :  { %v4863_v26 = vpop.f32.mrb[62].mxu1 }
 0x5dd   :  { %v4865_v27 = vpop.f32.mrb[63].mxu1 }
 0x68e   :  { %v4867_v4 = vpop.f32.mrb[32].mxu0  ;;  %v3324_v5 = vpop.f32.mrb[64].mxu1 }
 0x68f   :  { %v4869_v7 = vpop.f32.mrb[33].mxu0  ;;  %v1736_v10 = vpop.f32.mrb[65].mxu1 }
 0x690   :  { %3378 = vmatprep.mubr.f32.mxu0 %v1736_v10  ;;  %v2140_v10 = vld [vmem:[#allocation22 + $0x108] sm:$0xff] }
 0x691   :  { %3379 = vmatmul.mubr.f32.vlgmr.msra.gmra.mrb[48].mxu0 %v3324_v5  ;;  %v2139_v5 = vld [vmem:[#allocation22 + $0x100] sm:$0xff] }
 0x692   :  { %v4871_v14 = vpop.f32.mrb[34].mxu0  ;;  %v3327_v39 = vpop.f32.mrb[66].mxu1  ;;  %3840 = vmatpush3.bf16.msra.mxu0 %v3837_v0 }
 0x693   :  { %v4873_v40 = vpop.f32.mrb[35].mxu0  ;;  %v1746_v41 = vpop.f32.mrb[67].mxu1  ;;  %3842 = vmatprep.subr.bf16.mxu0 %v3841_v11 }
 0x694   :  { %3381 = vmatprep.mubr.f32.mxu0 %v1746_v41  ;;  %v3869_v41 = vpack.c.bf16 %v2140_v10, %v2139_v5 }
 0x695   :  { %3382 = vmatmul.mubr.f32.gmra.mrb[50].mxu0 %v3327_v39 }
 0x696   :  { %v4875_v44 = vpop.f32.mrb[36].mxu0  ;;  %v3330_v45 = vpop.f32.mrb[68].mxu1  ;;  %3844 = vmatpush3.bf16.msra.mxu0 %v3841_v11 }
 0x697   :  { %v4877_v46 = vpop.f32.mrb[37].mxu0  ;;  %v1756_v34 = vpop.f32.mrb[69].mxu1  ;;  %3846 = vmatprep.subr.bf16.mxu0 %v3845_v35 }
 0x698   :  { %3384 = vmatprep.mubr.f32.mxu0 %v1756_v34  ;;  %v2144_v34 = vld [vmem:[#allocation22 + $0x128] sm:$0xff] }
 0x699   :  { %3385 = vmatmul.mubr.f32.gmra.mrb[52].mxu0 %v3330_v45  ;;  %v2143_v45 = vld [vmem:[#allocation22 + $0x120] sm:$0xff] }
 0x69a   :  { %v4879_v49 = vpop.f32.mrb[38].mxu0  ;;  %v3333_v32 = vpop.f32.mrb[70].mxu1  ;;  %3848 = vmatpush3.bf16.msra.mxu0 %v3845_v35  ;;  %v2141_v35 = vld [vmem:[#allocation22 + $0x110] sm:$0xff] }
 0x69b   :  { %v4881_v18 = vpop.f32.mrb[39].mxu0  ;;  %v1766_v50 = vpop.f32.mrb[71].mxu1  ;;  %3850 = vmatprep.subr.bf16.mxu0 %v3849_v17  ;;  %v3873_v38 = vpack.c.bf16 %v2142_v43, %v2141_v35 }
 0x69c   :  { %3387 = vmatprep.mubr.f32.mxu0 %v1766_v50  ;;  %v2148_v50 = vld [vmem:[#allocation22 + $0x148] sm:$0xff] }
 0x69d   :  { %3388 = vmatmul.mubr.f32.gmra.mrb[54].mxu0 %v3333_v32  ;;  %v2147_v32 = vld [vmem:[#allocation22 + $0x140] sm:$0xff] }
 0x69e   :  { %v4883_v52 = vpop.f32.mrb[40].mxu0  ;;  %v3336_v53 = vpop.f32.mrb[72].mxu1  ;;  %3852 = vmatpush3.bf16.msra.mxu0 %v3849_v17  ;;  %v3877_v17 = vpack.c.bf16 %v2144_v34, %v2143_v45 }
 0x69f   :  { %v4885_v54 = vpop.f32.mrb[41].mxu0  ;;  %v1776_v25 = vpop.f32.mrb[73].mxu1  ;;  %3854 = vmatprep.subr.bf16.mxu0 %v3853_v51 }
 0x6a0   :  { %3390 = vmatprep.mubr.f32.mxu0 %v1776_v25 }
 0x6a1   :  { %3391 = vmatmul.mubr.f32.gmra.mrb[56].mxu0 %v3336_v53  ;;  %v2463_v53 = vld [vmem:[#allocation18] ss:$0 sm:$0xff] }
 0x6a2   :  { %v4887_v37 = vpop.f32.mrb[42].mxu0  ;;  %v3339_v29 = vpop.f32.mrb[74].mxu1  ;;  %3856 = vmatpush3.bf16.msra.mxu0 %v3853_v51  ;;  %v2150_v51 = vld [vmem:[#allocation22 + $0x158] sm:$0xff]  ;;  %v1215_v25 = vadd.f32 %v2463_v53, %v4841_v62  ;;  %v1225_v55 = vadd.f32 %v2463_v53, %v4845_v16  ;;  %v1230_v56 = vadd.f32 %v4843_v63, %v2463_v53  ;;  %v1250_v62 = vadd.f32 %v4851_v19, %v2463_v53 }
 0x6a3   :  { %v4889_v58 = vpop.f32.mrb[43].mxu0  ;;  %v1786_v59 = vpop.f32.mrb[75].mxu1  ;;  %3858 = vmatprep.subr.bf16.mxu0 %v3857_v36  ;;  %v1260_v16 = vadd.f32 %v4855_v20, %v2463_v53  ;;  %v1265_v63 = vadd.f32 %v2463_v53, %v4861_v24  ;;  %v4351_v19 = vmov 0.0|0.0   ;;  %v2528_v20 = vld [vmem:[#allocation24] ss:$0 sm:$0xff] }
 0x6a4   :  { %3393 = vmatprep.mubr.f32.mxu0 %v1786_v59  ;;  %3901 = vmatprep.subr.bf16.mxu1 %v4351_v19 }
 0x6a5   :  { %3394 = vmatmul.mubr.f32.gmra.mrb[58].mxu0 %v3339_v29 }
 0x6a6   :  { %v4891_v28 = vpop.f32.mrb[44].mxu0  ;;  %v3342_v30 = vpop.f32.mrb[76].mxu1  ;;  %3860 = vmatpush3.bf16.msra.mxu0 %v3857_v36  ;;  %v1220_v36 = vadd.f32 %v4839_v61, %v2463_v53  ;;  %v1255_v61 = vadd.f32 %v2463_v53, %v4857_v21  ;;  %v4353_v21 = vmov 0.0  }
 0x6a7   :  { %v1651_v0 = vpop.f32.mrb[45].mxu0  ;;  %v1796_v1 = vpop.f32.mrb[77].mxu1  ;;  %3862 = vmatprep.subr.bf16.mxu0 %v3861_v42  ;;  %3546 = vmatprep.mubr.msk.f32.mxu1 %vm4352_vm0, %v4353_v21 }
 0x6a8   :  { %3396 = vmatprep.mubr.f32.mxu0 %v1796_v1 }
 0x6a9   :  { %3397 = vmatmul.mubr.f32.gmra.mrb[60].mxu0 %v3342_v30 }
 0x6aa   :  { %v4893_v11 = vpop.f32.mrb[46].mxu0  ;;  %v3345_v12 = vpop.f32.mrb[78].mxu1  ;;  %3864 = vmatpush3.bf16.msra.mxu0 %v3861_v42 }
 0x6ab   :  { %v1661_v13 = vpop.f32.mrb[47].mxu0  ;;  %v1806_v39 = vpop.f32.mrb[79].mxu1  ;;  %3866 = vmatprep.subr.bf16.mxu0 %v3865_v3 }
 0x6ac   :  { %3399 = vmatprep.mubr.f32.mxu0 %v1806_v39 }
 0x6ad   :  { %3400 = vmatmul.mubr.f32.gmra.mrb[62].mxu0 %v3345_v12 }
 0x6ae   :  { %3868 = vmatpush3.bf16.msra.mxu0 %v3865_v3  ;;  %3434 = vmatprep.mubr.f32.mxu0 %v4869_v7  ;;  %v3881_v7 = vpack.c.bf16 %v2146_v48, %v2145_v31 }
 0x6af   :  { %3870 = vmatprep.subr.bf16.mxu0 %v3869_v41 }
 0x6b1   :  { %3435 = vmatmul.mubr.f32.vlgmr.msra.gmra.mrb[48].mxu0 %v4867_v4  ;;  %v3885_v4 = vpack.c.bf16 %v2148_v50, %v2147_v32 }
 0x6b2   :  { %3437 = vmatprep.mubr.f32.mxu0 %v4873_v40  ;;  %3872 = vmatpush3.bf16.msra.mxu0 %v3869_v41  ;;  %v2149_v40 = vld [vmem:[#allocation22 + $0x150] sm:$0xff] }
 0x6b3   :  { %3874 = vmatprep.subr.bf16.mxu0 %v3873_v38 }
 0x6b5   :  { %3438 = vmatmul.mubr.f32.gmra.mrb[50].mxu0 %v4871_v14  ;;  %v3889_v14 = vpack.c.bf16 %v2150_v51, %v2149_v40 }
 0x6b6   :  { %3440 = vmatprep.mubr.f32.mxu0 %v4877_v46  ;;  %3876 = vmatpush3.bf16.msra.mxu0 %v3873_v38  ;;  %v2151_v46 = vld [vmem:[#allocation22 + $0x160] sm:$0xff] }
 0x6b7   :  { %3878 = vmatprep.subr.bf16.mxu0 %v3877_v17 }
 0x6b9   :  { %3441 = vmatmul.mubr.f32.gmra.mrb[52].mxu0 %v4875_v44  ;;  %v3893_v44 = vpack.c.bf16 %v2152_v33, %v2151_v46 }
 0x6ba   :  { %3443 = vmatprep.mubr.f32.mxu0 %v4881_v18  ;;  %3880 = vmatpush3.bf16.msra.mxu0 %v3877_v17  ;;  %v2153_v18 = vld [vmem:[#allocation22 + $0x170] sm:$0xff] }
 0x6bb   :  { %3882 = vmatprep.subr.bf16.mxu0 %v3881_v7 }
 0x6bd   :  { %3444 = vmatmul.mubr.f32.gmra.mrb[54].mxu0 %v4879_v49  ;;  %v3897_v49 = vpack.c.bf16 %v2154_v22, %v2153_v18 }
 0x6be   :  { %3446 = vmatprep.mubr.f32.mxu0 %v4885_v54  ;;  %3884 = vmatpush3.bf16.msra.mxu0 %v3881_v7  ;;  %v1210_v54 = vadd.f32 %v4835_v6, %v2463_v53  ;;  %v1245_v6 = vadd.f32 %v2463_v53, %v4853_v15  ;;  %v1280_v15 = vadd.f32 %v4863_v26, %v2463_v53 }
 0x6bf   :  { %3886 = vmatprep.subr.bf16.mxu0 %v3885_v4 }
 0x6c1   :  { %3447 = vmatmul.mubr.f32.gmra.mrb[56].mxu0 %v4883_v52  ;;  %v1205_v52 = vadd.f32 %v2463_v53, %v4837_v47  ;;  %v1235_v47 = vadd.f32 %v2463_v53, %v4849_v9  ;;  %v1270_v9 = vadd.f32 %v4859_v23, %v2463_v53 }
 0x6c2   :  { %3449 = vmatprep.mubr.f32.mxu0 %v4889_v58  ;;  %3888 = vmatpush3.bf16.msra.mxu0 %v3885_v4 }
 0x6c3   :  { %3890 = vmatprep.subr.bf16.mxu0 %v3889_v14 }
 0x6c5   :  { %3450 = vmatmul.mubr.f32.gmra.mrb[58].mxu0 %v4887_v37  ;;  %v1240_v37 = vadd.f32 %v4847_v57, %v2463_v53  ;;  %v1275_v57 = vadd.f32 %v2463_v53, %v4865_v27 }
 0x6c6   :  { %3452 = vmatprep.mubr.f32.mxu0 %v1651_v0  ;;  %3892 = vmatpush3.bf16.msra.mxu0 %v3889_v14 }
 0x6c7   :  { %3894 = vmatprep.subr.bf16.mxu0 %v3893_v44 }
 0x6c9   :  { %3453 = vmatmul.mubr.f32.gmra.mrb[60].mxu0 %v4891_v28 }
 0x6ca   :  { %3455 = vmatprep.mubr.f32.mxu0 %v1661_v13  ;;  %3896 = vmatpush3.bf16.msra.mxu0 %v3893_v44 }
 0x6cb   :  { %3898 = vmatprep.subr.bf16.mxu0 %v3897_v49 }
 0x6cd   :  { %3456 = vmatmul.mubr.f32.gmra.mrb[62].mxu0 %v4893_v11 }
 0x6ce   :  { %3900 = vmatpush3.bf16.msra.mxu0 %v3897_v49  ;;  %3490 = vmatprep.mubr.f32.mxu0 %v1205_v52 }
 0x6d1   :  { %3491 = vmatmul.mubr.f32.vlgmr.msra.gmra.mrb[48].mxu0 %v1210_v54 }
 0x6d2   :  { %3493 = vmatprep.mubr.f32.mxu0 %v1215_v25 }
 0x6d5   :  { %3494 = vmatmul.mubr.f32.gmra.mrb[50].mxu0 %v1220_v36 }
 0x6d6   :  { %3496 = vmatprep.mubr.f32.mxu0 %v1225_v55 }
 0x6d9   :  { %3497 = vmatmul.mubr.f32.gmra.mrb[52].mxu0 %v1230_v56 }
 0x6da   :  { %3499 = vmatprep.mubr.f32.mxu0 %v1235_v47 }
 0x6dd   :  { %3500 = vmatmul.mubr.f32.gmra.mrb[54].mxu0 %v1240_v37 }
 0x6de   :  { %3502 = vmatprep.mubr.f32.mxu0 %v1245_v6 }
 0x6e1   :  { %3503 = vmatmul.mubr.f32.gmra.mrb[56].mxu0 %v1250_v62 }
 0x6e2   :  { %3505 = vmatprep.mubr.f32.mxu0 %v1255_v61 }
 0x6e5   :  { %3506 = vmatmul.mubr.f32.gmra.mrb[58].mxu0 %v1260_v16 }
 0x6e6   :  { %3508 = vmatprep.mubr.f32.mxu0 %v1265_v63  ;;  %v2355_v63 = vld [vmem:[#allocation25] sm:$0xff] }
 0x6e9   :  { %3509 = vmatmul.mubr.f32.gmra.mrb[60].mxu0 %v1270_v9  ;;  %v2433_v9 = vshrl.u32 %v1283_v8, 7 }
 0x6ea   :  { %3511 = vmatprep.mubr.f32.mxu0 %v1275_v57 }
 0x6eb   :  { %v2434_v57 = vsub.s32 0, %v2433_v9 }
 0x6ed   :  { %3512 = vmatmul.mubr.f32.gmra.mrb[62].mxu0 %v1280_v15  ;;  %v2430_v15 = vpop.permute.xlu0 %2429 }
 0x6ee   :  { %v2435_v21 = vrot.slane %v2430_v15, %v2434_v57 }
 0x7a4   :  { %v3492_v29 = vpop.f32.mrb[48].mxu0 }
 0x7a5   :  { %v2324_v24 = vadd.f32 %v3492_v29, %v2528_v20  ;;  %v2221_v58 = vpop.f32.mrb[49].mxu0 }
 0x7a6   :  { %v2323_v59 = vadd.f32 %v2528_v20, %v2221_v58 }
 0x7a7   :  { %v2340_v42 = vmax.f32 %v2324_v24, 0.0 }
 0x7a8   :  { %v2339_v23 = vmax.f32 %v2323_v59, 0.0  ;;  %v3495_v2 = vpop.f32.mrb[50].mxu0 }
 0x7a9   :  { %v2326_v27 = vadd.f32 %v3495_v2, %v2528_v20  ;;  %v2231_v60 = vpop.f32.mrb[51].mxu0 }
 0x7aa   :  { %v3902_v28 = vpack.c.bf16 %v2340_v42, %v2339_v23  ;;  %v2325_v30 = vadd.f32 %v2528_v20, %v2231_v60 }
 0x7ab   :  { %v2342_v26 = vmax.f32 %v2326_v27, 0.0 }
 0x7ac   :  { %v2341_v0 = vmax.f32 %v2325_v30, 0.0  ;;  %v3498_v1 = vpop.f32.mrb[52].mxu0  ;;  %3903 = vmatpush3.bf16.xpose.msra.mxu1 %v3902_v28 }
 0x7ad   :  { %v2328_v3 = vadd.f32 %v3498_v1, %v2528_v20  ;;  %v2241_v5 = vpop.f32.mrb[53].mxu0  ;;  %3904 = vmatprep.subr.bf16.mxu1 %v4351_v19 }
 0x7ae   :  { %v3905_v10 = vpack.c.bf16 %v2342_v26, %v2341_v0  ;;  %v2327_v11 = vadd.f32 %v2528_v20, %v2241_v5 }
 0x7af   :  { %v2344_v12 = vmax.f32 %v2328_v3, 0.0 }
 0x7b0   :  { %v2343_v13 = vmax.f32 %v2327_v11, 0.0  ;;  %v3501_v39 = vpop.f32.mrb[54].mxu0 }
 0x7b1   :  { %v2330_v41 = vadd.f32 %v3501_v39, %v2528_v20  ;;  %v2251_v35 = vpop.f32.mrb[55].mxu0 }
 0x7b2   :  { %v3908_v43 = vpack.c.bf16 %v2344_v12, %v2343_v13  ;;  %v2329_v38 = vadd.f32 %v2528_v20, %v2251_v35 }
 0x7b3   :  { %v2346_v45 = vmax.f32 %v2330_v41, 0.0 }
 0x7b4   :  { %v2345_v34 = vmax.f32 %v2329_v38, 0.0  ;;  %v3504_v17 = vpop.f32.mrb[56].mxu0  ;;  %3906 = vmatpush3.bf16.xpose.msra.mxu1 %v3905_v10 }
 0x7b5   :  { %v2332_v31 = vadd.f32 %v3504_v17, %v2528_v20  ;;  %v2261_v48 = vpop.f32.mrb[57].mxu0  ;;  %3907 = vmatprep.subr.bf16.mxu1 %v4351_v19 }
 0x7b6   :  { %v3911_v7 = vpack.c.bf16 %v2346_v45, %v2345_v34  ;;  %v2331_v32 = vadd.f32 %v2528_v20, %v2261_v48 }
 0x7b7   :  { %v2348_v50 = vmax.f32 %v2332_v31, 0.0 }
 0x7b8   :  { %v2347_v4 = vmax.f32 %v2331_v32, 0.0  ;;  %v3507_v40 = vpop.f32.mrb[58].mxu0 }
 0x7b9   :  { %v2334_v51 = vadd.f32 %v3507_v40, %v2528_v20  ;;  %v2271_v14 = vpop.f32.mrb[59].mxu0 }
 0x7ba   :  { %v3914_v46 = vpack.c.bf16 %v2348_v50, %v2347_v4  ;;  %v2333_v33 = vadd.f32 %v2528_v20, %v2271_v14 }
 0x7bb   :  { %v2350_v44 = vmax.f32 %v2334_v51, 0.0 }
 0x7bc   :  { %v2349_v18 = vmax.f32 %v2333_v33, 0.0  ;;  %v3510_v22 = vpop.f32.mrb[60].mxu0  ;;  %3909 = vmatpush3.bf16.xpose.msra.mxu1 %v3908_v43 }
 0x7bd   :  { %v2336_v49 = vadd.f32 %v3510_v22, %v2528_v20  ;;  %v2281_v53 = vpop.f32.mrb[61].mxu0  ;;  %3910 = vmatprep.subr.bf16.mxu1 %v4351_v19 }
 0x7be   :  { %v3917_v52 = vpack.c.bf16 %v2350_v44, %v2349_v18  ;;  %v2335_v54 = vadd.f32 %v2528_v20, %v2281_v53 }
 0x7bf   :  { %v2352_v25 = vmax.f32 %v2336_v49, 0.0 }
 0x7c0   :  { %v2351_v36 = vmax.f32 %v2335_v54, 0.0  ;;  %v3513_v55 = vpop.f32.mrb[62].mxu0 }
 0x7c1   :  { %v2338_v56 = vadd.f32 %v3513_v55, %v2528_v20  ;;  %v2291_v47 = vpop.f32.mrb[63].mxu0 }
 0x7c2   :  { %v3920_v37 = vpack.c.bf16 %v2352_v25, %v2351_v36  ;;  %v2337_v6 = vadd.f32 %v2528_v20, %v2291_v47 }
 0x7c3   :  { %v2354_v62 = vmax.f32 %v2338_v56, 0.0 }
 0x7c4   :  { %v2353_v61 = vmax.f32 %v2337_v6, 0.0  ;;  %3912 = vmatpush3.bf16.xpose.msra.mxu1 %v3911_v7 }
 0x7c5   :  { %3913 = vmatprep.subr.bf16.mxu1 %v4351_v19 }
 0x7c6   :  { %v3923_v16 = vpack.c.bf16 %v2354_v62, %v2353_v61 }
 0x7cc   :  { %3915 = vmatpush3.bf16.xpose.msra.mxu1 %v3914_v46 }
 0x7cd   :  { %3916 = vmatprep.subr.bf16.mxu1 %v4351_v19 }
 0x7d4   :  { %3918 = vmatpush3.bf16.xpose.msra.mxu1 %v3917_v52 }
 0x7d5   :  { %3919 = vmatprep.subr.bf16.mxu1 %v4351_v19 }
 0x7dc   :  { %3921 = vmatpush3.bf16.xpose.msra.mxu1 %v3920_v37 }
 0x7dd   :  { %3922 = vmatprep.subr.bf16.mxu1 %v4351_v19 }
 0x7e4   :  { %3924 = vmatpush3.bf16.xpose.msra.mxu1 %v3923_v16 }
 0x7eb   :  { %3547 = vmatmul.mubr.f32.vlgmr.msra.gmra.mrb[80].mxu1 %v2355_v63 }
 0x8be   :  { %v2422_v20 = vpop.f32.mrb[80].mxu1 }
 0x8bf   :  { %v2436_v29 = vadd.f32 %v2435_v21, %v2422_v20  ;;  %v3548_v24 = vpop.f32.mrb[81].mxu1 }
 0x8c1   :  { %2437 = vst [vmem:[#allocation27] sm:$0x1] %v2436_v29 }
 0x8c2   :  { %4302 = shalt.err (!%p4299_p4)
}
 0x8c3   :  { %s4303_s7 = scalar_lea.hbm %s4961_s15, 16 }
 0x8c4   :  { %p4304_p5 = scmp.ne.s32.totalorder %s4961_s15, %s4303_s7  ;;  %p4307_p6 = scmp.lt.u32.totalorder %s4303_s7, %s4961_s15 }
 0x8c6   :  { %p4309_p7 = pnand %p4307_p6, %p4304_p5 }
 0x8c8   :  { %4312 = shalt.err (!%p4309_p7)
}
 0x8c9   :  { %2447 = dma.vmem_to_hbm [thread:$0]  %s2445_s24, 16, %s4961_s15, [#allocation6]  }
 0x8ca   :  { %4329 = dma.done.wait [#allocation6], 16  }
 0x8cb   :  { %4330 = vsyncadd [#allocation6], 4294967280 }
 0x8cc   :  { %2451 = vsyncpa [#allocation5], 1 }
 0x8cd   :  { %2452 = vsyncpa [#allocation8], 1 }
 0x8ce   :  { %2453 = vsyncpa [#allocation11], 1 }
 0x8cf   :  { %2454 = vsyncpa [#allocation14], 1 }
 0x8d0   :  { %2455 = vsyncpa [#allocation17], 1 }
 0x8d1   :  { %2456 = vsyncpa [#allocation20], 1 }
 0x8d2   :  { %2457 = vsyncpa [#allocation23], 1 }
 0x8d3   :  { %2458 = vsyncpa [#allocation26], 1 }
 0x8d4   :  { %2459 = vsyncpa [#allocation6], 1 }

</bundles_post_ra>
